<compile_context>
chip_gen: v5e
topology: v5e:2x2
jax: 0.10.0
libtpu: 0.0.40
codegen_flags: <defaults>
</compile_context>

<pallas_src>
import functools
import math

import jax
import jax.numpy as jnp
from jax import lax
from jax.experimental import pallas as pl
from jax.experimental.pallas import tpu as pltpu


# ----------------------------- config -----------------------------
class Config:
    vocab_size = 100
    hidden_size = 32
    num_attention_heads = 2
    intermediate_size = 128
    max_position_embeddings = 64
    type_vocab_size = 2
    num_pp_hidden_layers = 2
    is_first_stage = True
    is_last_stage = True
    layer_norm_eps = 1e-12


# --------------------------- kernel helpers ---------------------------
def _layer_norm(x, gamma, beta, eps):
    # x: (rows, H) f32 ; gamma/beta: (1, H).  Two independent reductions
    # (sum, sum of squares) instead of mean -> recenter -> second reduction.
    inv_h = 1.0 / x.shape[-1]
    s1 = jnp.sum(x, axis=-1, keepdims=True)
    s2 = jnp.sum(x * x, axis=-1, keepdims=True)
    mean = s1 * inv_h
    var = s2 * inv_h - mean * mean
    return (x - mean) * lax.rsqrt(var + eps) * gamma + beta


def _erf(x):
    # Abramowitz & Stegun 7.1.26 (|err| < 1.5e-7): built only from ops with
    # guaranteed Mosaic lowerings (exp / mul / add / div / select).
    a1, a2, a3, a4, a5 = (0.254829592, -0.284496736, 1.421413741,
                          -1.453152027, 1.061405429)
    p = 0.3275911
    ax = jnp.abs(x)
    t = 1.0 / (1.0 + p * ax)
    poly = ((((a5 * t + a4) * t + a3) * t + a2) * t + a1) * t
    y = 1.0 - poly * jnp.exp(-ax * ax)
    return jnp.where(x >= 0.0, y, -y)


_INV_SQRT2 = 1.0 / math.sqrt(2.0)


def _gelu(x):
    # BERT's exact (erf-based) GELU
    return 0.5 * x * (1.0 + _erf(x * _INV_SQRT2))


# Packed vector-slab row layout (rows, H):
#   row 0: emb_ln_gamma   row 1: emb_ln_beta   row 2: pooler_bias
#   rows 3 + 6*l + [0..5]: b_attn_out, ln1_g, ln1_b, b_out, ln2_g, ln2_b
_NUM_GLOBAL_ROWS = 3
_ROWS_PER_LAYER = 6


# --------------------------- fused Pallas kernel ---------------------------
def fused_bert_kernel(x_ref, mask_ref, wqkv_ref, wao_ref, wi_ref, wo_ref,
                      vec_ref, bqkv_ref, bi_ref, pw_ref,
                      out_ref, ctx_scratch,
                      *, batch, seq, num_heads, num_layers, eps):
    x = x_ref[...].astype(jnp.float32)              # (B*S, H) summed embeddings
    H = x.shape[-1]
    dh = H // num_heads

    def row(i):                                     # (1, H) row of the packed slab
        return vec_ref[i:i + 1, :]

    # ---- BertEmbeddings: (word + pos + type) summed in the wrapper, LN here
    x = _layer_norm(x, row(0), row(1), eps)

    for l in range(num_layers):                     # static unroll (num_layers = 2)
        base = _NUM_GLOBAL_ROWS + _ROWS_PER_LAYER * l
        b_ao = row(base + 0)
        ln1_g, ln1_b = row(base + 1), row(base + 2)
        b_out = row(base + 3)
        ln2_g, ln2_b = row(base + 4), row(base + 5)

        # ---- fused QKV: one (B*S,H)x(H,3H) bf16 MXU pass, static lane split.
        #      wq/bq were pre-scaled by 1/sqrt(dh) at pack time.
        qkv = jnp.dot(x.astype(jnp.bfloat16), wqkv_ref[l],
                      preferred_element_type=jnp.float32) + bqkv_ref[l:l + 1, :]
        q = qkv[:, 0:H].astype(jnp.bfloat16)
        k = qkv[:, H:2 * H].astype(jnp.bfloat16)
        v = qkv[:, 2 * H:3 * H].astype(jnp.bfloat16)

        # ---- per-(batch, head) scores / softmax / context; contexts land at
        #      static offsets of one (B*S, H) scratch so the output projection
        #      is a single matmul.
        for b in range(batch):                      # static unrolled batch loop
            rs = slice(b * seq, (b + 1) * seq)
            mask_b = mask_ref[b:b + 1, :]           # (1, S) additive mask
            for hd in range(num_heads):             # static unrolled head loop
                cs = slice(hd * dh, (hd + 1) * dh)
                scores = lax.dot_general(q[rs, cs], k[rs, cs],
                                         (((1,), (1,)), ((), ())),
                                         preferred_element_type=jnp.float32)
                scores = scores + mask_b            # broadcast over queries
                scores = scores - jnp.max(scores, axis=-1, keepdims=True)
                p = jnp.exp(scores)
                p = p * pl.reciprocal(jnp.sum(p, axis=-1, keepdims=True),
                                      approx=True)
                ctx_scratch[rs, cs] = jnp.dot(p.astype(jnp.bfloat16), v[rs, cs],
                                              preferred_element_type=jnp.float32)

        # ---- attention output projection (one matmul) + BertSelfOutput LN
        attn = jnp.dot(ctx_scratch[...].astype(jnp.bfloat16), wao_ref[l],
                       preferred_element_type=jnp.float32) + b_ao
        h1 = _layer_norm(x + attn, ln1_g, ln1_b, eps)

        # ---- BertIntermediate (GELU) + BertOutput (residual + LN)
        inter = _gelu(jnp.dot(h1.astype(jnp.bfloat16), wi_ref[l],
                              preferred_element_type=jnp.float32)
                      + bi_ref[l:l + 1, :])
        out = jnp.dot(inter.astype(jnp.bfloat16), wo_ref[l],
                      preferred_element_type=jnp.float32) + b_out
        x = _layer_norm(h1 + out, ln2_g, ln2_b, eps)

    # ---- BertPooler: dense + tanh on each sequence's [CLS] (first-token) row
    cls_rows = jnp.concatenate(
        [x[b * seq:b * seq + 1, :] for b in range(batch)], axis=0)   # (B, H)
    pooled = jnp.tanh(jnp.dot(cls_rows.astype(jnp.bfloat16), pw_ref[...],
                              preferred_element_type=jnp.float32) + row(2))
    out_ref[...] = pooled.astype(out_ref.dtype)


# --------------------------- wrapper ---------------------------
def pp_bert_model(params, cfg, input_ids, encoder_input=None,
                  token_type_ids=None, attention_mask=None):
    assert cfg.is_first_stage and cfg.is_last_stage, \
        "fused kernel implements the first+last stage configuration"

    B, S = input_ids.shape
    H, I, L = cfg.hidden_size, cfg.intermediate_size, cfg.num_pp_hidden_layers
    nh = cfg.num_attention_heads

    if attention_mask is None:
        attention_mask = jnp.ones_like(input_ids)
    if token_type_ids is None:
        token_type_ids = jnp.zeros_like(input_ids)

    # extended additive mask: same semantics as (1 - mask[:,None,None,:]) * -10000
    ext_mask = (1.0 - attention_mask.astype(jnp.float32)) * -10000.0   # (B, S)

    # embedding gathers are XLA glue; the sum + LN + all layers + pooler are fused
    x_emb = (jnp.take(params["word_emb"], input_ids, axis=0)
             + params["pos_emb"][:S][None]
             + jnp.take(params["tok_emb"], token_type_ids, axis=0))    # (B,S,H)
    x_rows = x_emb.reshape(B * S, H)            # batch folded into the row axis

    operands = (x_rows, ext_mask,
                params["w_qkv"], params["w_attn_out"], params["w_inter"],
                params["w_out"], params["vec_slab"], params["b_qkv"],
                params["b_inter"], params["pool_w"])

    # advisory cost estimate so XLA schedules the gathers around the custom call
    BS = B * S
    per_layer_flops = (2 * BS * H * 3 * H           # fused QKV projection
                       + 2 * 2 * B * S * S * H      # scores + context (all heads)
                       + 2 * BS * H * H             # attention output projection
                       + 2 * 2 * BS * H * I)        # intermediate + output dense
    flops = L * per_layer_flops + 2 * B * H * H     # + pooler
    transcendentals = L * (B * nh * S * S + B * nh * S + BS * I) + B * H
    bytes_accessed = (sum(int(a.size) * a.dtype.itemsize for a in operands)
                      + B * H * 4)

    vmem_specs = [pl.BlockSpec(memory_space=pltpu.MemorySpace.VMEM)
                  for _ in operands]

    pooled = pl.pallas_call(
        functools.partial(fused_bert_kernel, batch=B, seq=S, num_heads=nh,
                          num_layers=L, eps=cfg.layer_norm_eps),
        out_shape=jax.ShapeDtypeStruct((B, H), jnp.float32),
        in_specs=vmem_specs,
        out_specs=pl.BlockSpec(memory_space=pltpu.MemorySpace.VMEM),
        scratch_shapes=[pltpu.VMEM((B * S, H), jnp.float32)],   # per-head contexts
        cost_estimate=pl.CostEstimate(flops=flops,
                                      transcendentals=transcendentals,
                                      bytes_accessed=bytes_accessed),
    )(*operands)

    return pooled                                   # (B, H)


# --------------------------- deterministic params ---------------------------
def init_params(cfg, key):
    H, I, L = cfg.hidden_size, cfg.intermediate_size, cfg.num_pp_hidden_layers
    nh = cfg.num_attention_heads
    dh = H // nh
    scale = 1.0 / math.sqrt(dh)

    def nrm(k, shape, s=0.02):
        return s * jax.random.normal(k, shape, jnp.float32)

    ks = jax.random.split(key, 8)
    lk = jax.random.split(ks[4], 6)

    # one BertLayer parameter set replicated across pp layers (matches
    # nn.ModuleList([copy.deepcopy(layer) ...]) at initialization)
    wq, wk, wv = nrm(lk[0], (H, H)), nrm(lk[1], (H, H)), nrm(lk[2], (H, H))
    wao = nrm(lk[3], (H, H))
    wi, wo = nrm(lk[4], (H, I)), nrm(lk[5], (I, H))
    bq = jnp.zeros((H,), jnp.float32)
    bk = jnp.zeros((H,), jnp.float32)
    bv = jnp.zeros((H,), jnp.float32)

    # fold the 1/sqrt(dh) attention-score scale into wq / bq (free at pack time)
    w_qkv1 = jnp.concatenate([wq * scale, wk, wv], axis=1)      # (H, 3H)
    b_qkv1 = jnp.concatenate([bq * scale, bk, bv], axis=0)      # (3H,)

    def stack(a):
        return jnp.stack([a] * L, axis=0)

    zeros_h = jnp.zeros((H,), jnp.float32)
    ones_h = jnp.ones((H,), jnp.float32)

    # packed (rows, H) f32 slab: [emb_ln_g, emb_ln_b, pool_b] + per layer
    # [b_attn_out, ln1_g, ln1_b, b_out, ln2_g, ln2_b]
    rows = [ones_h, zeros_h, zeros_h]
    for _ in range(L):
        rows += [zeros_h, ones_h, zeros_h, zeros_h, ones_h, zeros_h]
    vec_slab = jnp.stack(rows, axis=0)

    return {
        "word_emb": nrm(ks[0], (cfg.vocab_size, H)),
        "pos_emb": nrm(ks[1], (cfg.max_position_embeddings, H)),
        "tok_emb": nrm(ks[2], (cfg.type_vocab_size, H)),
        "pool_w": nrm(ks[3], (H, H)).astype(jnp.bfloat16),
        "w_qkv": stack(w_qkv1).astype(jnp.bfloat16),            # (L, H, 3H) bf16
        "b_qkv": stack(b_qkv1),                                 # (L, 3H) f32
        "w_attn_out": stack(wao).astype(jnp.bfloat16),          # (L, H, H) bf16
        "w_inter": stack(wi).astype(jnp.bfloat16),              # (L, H, I) bf16
        "w_out": stack(wo).astype(jnp.bfloat16),                # (L, I, H) bf16
        "b_inter": jnp.zeros((L, I), jnp.float32),
        "vec_slab": vec_slab,
    }


# ----------------------------- main -----------------------------
if __name__ == "__main__":
    cfg = Config()
    B, S = 2, 8

    key = jax.random.PRNGKey(0)
    pkey, ikey = jax.random.split(key)
    params = init_params(cfg, pkey)

    input_ids = jax.random.randint(ikey, (B, S), 0, cfg.vocab_size, dtype=jnp.int32)
    token_type_ids = jnp.zeros((B, S), jnp.int32)
    # mask out the last two positions to exercise the additive attention mask
    attention_mask = jnp.ones((B, S), jnp.int32).at[:, S - 2:].set(0)

    out = pp_bert_model(params, cfg, input_ids,
                        token_type_ids=token_type_ids,
                        attention_mask=attention_mask)
    jax.block_until_ready(out)
    assert out.shape == (B, cfg.hidden_size)
    print("KERNEL_OK")
</pallas_src>

<mosaic_0001>
module attributes {stable_mosaic.version = 11 : i64} {
  func.func @fused_bert_kernel(%arg0: memref<16x32xf32, #tpu.memory_space<vmem>>, %arg1: memref<2x8xf32, #tpu.memory_space<vmem>>, %arg2: memref<2x32x96xbf16, #tpu.memory_space<vmem>>, %arg3: memref<2x32x32xbf16, #tpu.memory_space<vmem>>, %arg4: memref<2x32x128xbf16, #tpu.memory_space<vmem>>, %arg5: memref<2x128x32xbf16, #tpu.memory_space<vmem>>, %arg6: memref<15x32xf32, #tpu.memory_space<vmem>>, %arg7: memref<2x96xf32, #tpu.memory_space<vmem>>, %arg8: memref<2x128xf32, #tpu.memory_space<vmem>>, %arg9: memref<32x32xbf16, #tpu.memory_space<vmem>>, %arg10: memref<2x32xf32, #tpu.memory_space<vmem>>, %arg11: memref<16x32xf32, #tpu.memory_space<vmem>>) attributes {dimension_semantics = [], scalar_prefetch = 0 : i64, scratch_operands = 1 : i64, tpu.core_type = #tpu.core_type<tc>} {
    %c0 = arith.constant 0 : index
    %c0_0 = arith.constant 0 : index
    %0 = vector.load %arg0[%c0, %c0_0] : memref<16x32xf32, #tpu.memory_space<vmem>>, vector<16x32xf32>
    %c0_1 = arith.constant 0 : index
    %c0_2 = arith.constant 0 : index
    %1 = vector.load %arg6[%c0_1, %c0_2] : memref<15x32xf32, #tpu.memory_space<vmem>>, vector<1x32xf32>
    %c1 = arith.constant 1 : index
    %c0_3 = arith.constant 0 : index
    %2 = vector.load %arg6[%c1, %c0_3] : memref<15x32xf32, #tpu.memory_space<vmem>>, vector<1x32xf32>
    %cst = arith.constant dense<0.000000e+00> : vector<16xf32>
    %3 = vector.multi_reduction <add>, %0, %cst [1] : vector<16x32xf32> to vector<16xf32>
    %4 = vector.shape_cast %3 : vector<16xf32> to vector<16x1xf32>
    %5 = arith.mulf %0, %0 : vector<16x32xf32>
    %cst_4 = arith.constant dense<0.000000e+00> : vector<16xf32>
    %6 = vector.multi_reduction <add>, %5, %cst_4 [1] : vector<16x32xf32> to vector<16xf32>
    %7 = vector.shape_cast %6 : vector<16xf32> to vector<16x1xf32>
    %cst_5 = arith.constant 3.125000e-02 : f32
    %8 = vector.broadcast %cst_5 : f32 to vector<16x1xf32>
    %9 = arith.mulf %4, %8 : vector<16x1xf32>
    %cst_6 = arith.constant 3.125000e-02 : f32
    %10 = vector.broadcast %cst_6 : f32 to vector<16x1xf32>
    %11 = arith.mulf %7, %10 : vector<16x1xf32>
    %12 = arith.mulf %9, %9 : vector<16x1xf32>
    %13 = arith.subf %11, %12 : vector<16x1xf32>
    %14 = vector.broadcast %9 : vector<16x1xf32> to vector<16x32xf32>
    %15 = arith.subf %0, %14 : vector<16x32xf32>
    %cst_7 = arith.constant 9.99999996E-13 : f32
    %16 = vector.broadcast %cst_7 : f32 to vector<16x1xf32>
    %17 = arith.addf %13, %16 : vector<16x1xf32>
    %18 = math.rsqrt %17 : vector<16x1xf32>
    %19 = vector.broadcast %18 : vector<16x1xf32> to vector<16x32xf32>
    %20 = arith.mulf %15, %19 : vector<16x32xf32>
    %21 = vector.broadcast %1 : vector<1x32xf32> to vector<16x32xf32>
    %22 = arith.mulf %20, %21 : vector<16x32xf32>
    %23 = vector.broadcast %2 : vector<1x32xf32> to vector<16x32xf32>
    %24 = arith.addf %22, %23 : vector<16x32xf32>
    %c3 = arith.constant 3 : index
    %c0_8 = arith.constant 0 : index
    %25 = vector.load %arg6[%c3, %c0_8] : memref<15x32xf32, #tpu.memory_space<vmem>>, vector<1x32xf32>
    %c4 = arith.constant 4 : index
    %c0_9 = arith.constant 0 : index
    %26 = vector.load %arg6[%c4, %c0_9] : memref<15x32xf32, #tpu.memory_space<vmem>>, vector<1x32xf32>
    %c5 = arith.constant 5 : index
    %c0_10 = arith.constant 0 : index
    %27 = vector.load %arg6[%c5, %c0_10] : memref<15x32xf32, #tpu.memory_space<vmem>>, vector<1x32xf32>
    %c6 = arith.constant 6 : index
    %c0_11 = arith.constant 0 : index
    %28 = vector.load %arg6[%c6, %c0_11] : memref<15x32xf32, #tpu.memory_space<vmem>>, vector<1x32xf32>
    %c7 = arith.constant 7 : index
    %c0_12 = arith.constant 0 : index
    %29 = vector.load %arg6[%c7, %c0_12] : memref<15x32xf32, #tpu.memory_space<vmem>>, vector<1x32xf32>
    %c8 = arith.constant 8 : index
    %c0_13 = arith.constant 0 : index
    %30 = vector.load %arg6[%c8, %c0_13] : memref<15x32xf32, #tpu.memory_space<vmem>>, vector<1x32xf32>
    %31 = arith.truncf %24 : vector<16x32xf32> to vector<16x32xbf16>
    %c0_14 = arith.constant 0 : index
    %c0_15 = arith.constant 0 : index
    %c0_16 = arith.constant 0 : index
    %32 = vector.load %arg2[%c0_14, %c0_15, %c0_16] : memref<2x32x96xbf16, #tpu.memory_space<vmem>>, vector<1x32x96xbf16>
    %33 = vector.shape_cast %32 : vector<1x32x96xbf16> to vector<32x96xbf16>
    %cst_17 = arith.constant dense<0.000000e+00> : vector<16x96xf32>
    %34 = tpu.matmul %31, %33, %cst_17 {dimension_numbers = #tpu.dot_dimension_numbers<[1], [0], [0], [1], [0, 0, 1, 1], [], []>} : vector<16x32xbf16>, vector<32x96xbf16>, vector<16x96xf32> -> vector<16x96xf32>
    %c0_18 = arith.constant 0 : index
    %c0_19 = arith.constant 0 : index
    %35 = vector.load %arg7[%c0_18, %c0_19] : memref<2x96xf32, #tpu.memory_space<vmem>>, vector<1x96xf32>
    %36 = vector.broadcast %35 : vector<1x96xf32> to vector<16x96xf32>
    %37 = arith.addf %34, %36 : vector<16x96xf32>
    %38 = vector.extract_strided_slice %37 {offsets = [0, 0], sizes = [16, 32], strides = [1, 1]} : vector<16x96xf32> to vector<16x32xf32>
    %39 = arith.truncf %38 : vector<16x32xf32> to vector<16x32xbf16>
    %40 = vector.extract_strided_slice %37 {offsets = [0, 32], sizes = [16, 32], strides = [1, 1]} : vector<16x96xf32> to vector<16x32xf32>
    %41 = arith.truncf %40 : vector<16x32xf32> to vector<16x32xbf16>
    %42 = vector.extract_strided_slice %37 {offsets = [0, 64], sizes = [16, 32], strides = [1, 1]} : vector<16x96xf32> to vector<16x32xf32>
    %43 = arith.truncf %42 : vector<16x32xf32> to vector<16x32xbf16>
    %c0_20 = arith.constant 0 : index
    %c0_21 = arith.constant 0 : index
    %44 = vector.load %arg1[%c0_20, %c0_21] : memref<2x8xf32, #tpu.memory_space<vmem>>, vector<1x8xf32>
    %45 = vector.extract_strided_slice %39 {offsets = [0, 0], sizes = [8, 16], strides = [1, 1]} : vector<16x32xbf16> to vector<8x16xbf16>
    %46 = vector.extract_strided_slice %41 {offsets = [0, 0], sizes = [8, 16], strides = [1, 1]} : vector<16x32xbf16> to vector<8x16xbf16>
    %cst_22 = arith.constant dense<0.000000e+00> : vector<8x8xf32>
    %47 = tpu.matmul %45, %46, %cst_22 {dimension_numbers = #tpu.dot_dimension_numbers<[1], [1], [0], [0], [0, 0, 1, 0], [], []>} : vector<8x16xbf16>, vector<8x16xbf16>, vector<8x8xf32> -> vector<8x8xf32>
    %48 = vector.broadcast %44 : vector<1x8xf32> to vector<8x8xf32>
    %49 = arith.addf %47, %48 : vector<8x8xf32>
    %cst_23 = arith.constant dense<0xFF800000> : vector<8xf32>
    %50 = vector.multi_reduction <maximumf>, %49, %cst_23 [1] : vector<8x8xf32> to vector<8xf32>
    %51 = vector.shape_cast %50 : vector<8xf32> to vector<8x1xf32>
    %52 = vector.broadcast %51 : vector<8x1xf32> to vector<8x8xf32>
    %53 = arith.subf %49, %52 : vector<8x8xf32>
    %54 = math.exp %53 : vector<8x8xf32>
    %cst_24 = arith.constant dense<0.000000e+00> : vector<8xf32>
    %55 = vector.multi_reduction <add>, %54, %cst_24 [1] : vector<8x8xf32> to vector<8xf32>
    %56 = vector.shape_cast %55 : vector<8xf32> to vector<8x1xf32>
    %57 = tpu.reciprocal %56 {approx = true} : vector<8x1xf32> -> vector<8x1xf32>
    %58 = vector.broadcast %57 : vector<8x1xf32> to vector<8x8xf32>
    %59 = arith.mulf %54, %58 : vector<8x8xf32>
    %60 = arith.truncf %59 : vector<8x8xf32> to vector<8x8xbf16>
    %61 = vector.extract_strided_slice %43 {offsets = [0, 0], sizes = [8, 16], strides = [1, 1]} : vector<16x32xbf16> to vector<8x16xbf16>
    %cst_25 = arith.constant dense<0.000000e+00> : vector<8x16xf32>
    %62 = tpu.matmul %60, %61, %cst_25 {dimension_numbers = #tpu.dot_dimension_numbers<[1], [0], [0], [1], [0, 0, 1, 1], [], []>} : vector<8x8xbf16>, vector<8x16xbf16>, vector<8x16xf32> -> vector<8x16xf32>
    %c0_26 = arith.constant 0 : index
    %c0_27 = arith.constant 0 : index
    %63 = vector.load %arg11[%c0_26, %c0_27] : memref<16x32xf32, #tpu.memory_space<vmem>>, vector<8x16xf32>
    tpu.vector_store %arg11[%c0_26, %c0_27], %62 {strides = array<i32>} : memref<16x32xf32, #tpu.memory_space<vmem>>, vector<8x16xf32>,
    %64 = vector.extract_strided_slice %39 {offsets = [0, 16], sizes = [8, 16], strides = [1, 1]} : vector<16x32xbf16> to vector<8x16xbf16>
    %65 = vector.extract_strided_slice %41 {offsets = [0, 16], sizes = [8, 16], strides = [1, 1]} : vector<16x32xbf16> to vector<8x16xbf16>
    %cst_28 = arith.constant dense<0.000000e+00> : vector<8x8xf32>
    %66 = tpu.matmul %64, %65, %cst_28 {dimension_numbers = #tpu.dot_dimension_numbers<[1], [1], [0], [0], [0, 0, 1, 0], [], []>} : vector<8x16xbf16>, vector<8x16xbf16>, vector<8x8xf32> -> vector<8x8xf32>
    %67 = vector.broadcast %44 : vector<1x8xf32> to vector<8x8xf32>
    %68 = arith.addf %66, %67 : vector<8x8xf32>
    %cst_29 = arith.constant dense<0xFF800000> : vector<8xf32>
    %69 = vector.multi_reduction <maximumf>, %68, %cst_29 [1] : vector<8x8xf32> to vector<8xf32>
    %70 = vector.shape_cast %69 : vector<8xf32> to vector<8x1xf32>
    %71 = vector.broadcast %70 : vector<8x1xf32> to vector<8x8xf32>
    %72 = arith.subf %68, %71 : vector<8x8xf32>
    %73 = math.exp %72 : vector<8x8xf32>
    %cst_30 = arith.constant dense<0.000000e+00> : vector<8xf32>
    %74 = vector.multi_reduction <add>, %73, %cst_30 [1] : vector<8x8xf32> to vector<8xf32>
    %75 = vector.shape_cast %74 : vector<8xf32> to vector<8x1xf32>
    %76 = tpu.reciprocal %75 {approx = true} : vector<8x1xf32> -> vector<8x1xf32>
    %77 = vector.broadcast %76 : vector<8x1xf32> to vector<8x8xf32>
    %78 = arith.mulf %73, %77 : vector<8x8xf32>
    %79 = arith.truncf %78 : vector<8x8xf32> to vector<8x8xbf16>
    %80 = vector.extract_strided_slice %43 {offsets = [0, 16], sizes = [8, 16], strides = [1, 1]} : vector<16x32xbf16> to vector<8x16xbf16>
    %cst_31 = arith.constant dense<0.000000e+00> : vector<8x16xf32>
    %81 = tpu.matmul %79, %80, %cst_31 {dimension_numbers = #tpu.dot_dimension_numbers<[1], [0], [0], [1], [0, 0, 1, 1], [], []>} : vector<8x8xbf16>, vector<8x16xbf16>, vector<8x16xf32> -> vector<8x16xf32>
    %c0_32 = arith.constant 0 : index
    %c16 = arith.constant 16 : index
    %82 = vector.load %arg11[%c0_32, %c16] : memref<16x32xf32, #tpu.memory_space<vmem>>, vector<8x16xf32>
    tpu.vector_store %arg11[%c0_32, %c16], %81 {strides = array<i32>} : memref<16x32xf32, #tpu.memory_space<vmem>>, vector<8x16xf32>,
    %c1_33 = arith.constant 1 : index
    %c0_34 = arith.constant 0 : index
    %83 = vector.load %arg1[%c1_33, %c0_34] : memref<2x8xf32, #tpu.memory_space<vmem>>, vector<1x8xf32>
    %84 = vector.extract_strided_slice %39 {offsets = [8, 0], sizes = [8, 16], strides = [1, 1]} : vector<16x32xbf16> to vector<8x16xbf16>
    %85 = vector.extract_strided_slice %41 {offsets = [8, 0], sizes = [8, 16], strides = [1, 1]} : vector<16x32xbf16> to vector<8x16xbf16>
    %cst_35 = arith.constant dense<0.000000e+00> : vector<8x8xf32>
    %86 = tpu.matmul %84, %85, %cst_35 {dimension_numbers = #tpu.dot_dimension_numbers<[1], [1], [0], [0], [0, 0, 1, 0], [], []>} : vector<8x16xbf16>, vector<8x16xbf16>, vector<8x8xf32> -> vector<8x8xf32>
    %87 = vector.broadcast %83 : vector<1x8xf32> to vector<8x8xf32>
    %88 = arith.addf %86, %87 : vector<8x8xf32>
    %cst_36 = arith.constant dense<0xFF800000> : vector<8xf32>
    %89 = vector.multi_reduction <maximumf>, %88, %cst_36 [1] : vector<8x8xf32> to vector<8xf32>
    %90 = vector.shape_cast %89 : vector<8xf32> to vector<8x1xf32>
    %91 = vector.broadcast %90 : vector<8x1xf32> to vector<8x8xf32>
    %92 = arith.subf %88, %91 : vector<8x8xf32>
    %93 = math.exp %92 : vector<8x8xf32>
    %cst_37 = arith.constant dense<0.000000e+00> : vector<8xf32>
    %94 = vector.multi_reduction <add>, %93, %cst_37 [1] : vector<8x8xf32> to vector<8xf32>
    %95 = vector.shape_cast %94 : vector<8xf32> to vector<8x1xf32>
    %96 = tpu.reciprocal %95 {approx = true} : vector<8x1xf32> -> vector<8x1xf32>
    %97 = vector.broadcast %96 : vector<8x1xf32> to vector<8x8xf32>
    %98 = arith.mulf %93, %97 : vector<8x8xf32>
    %99 = arith.truncf %98 : vector<8x8xf32> to vector<8x8xbf16>
    %100 = vector.extract_strided_slice %43 {offsets = [8, 0], sizes = [8, 16], strides = [1, 1]} : vector<16x32xbf16> to vector<8x16xbf16>
    %cst_38 = arith.constant dense<0.000000e+00> : vector<8x16xf32>
    %101 = tpu.matmul %99, %100, %cst_38 {dimension_numbers = #tpu.dot_dimension_numbers<[1], [0], [0], [1], [0, 0, 1, 1], [], []>} : vector<8x8xbf16>, vector<8x16xbf16>, vector<8x16xf32> -> vector<8x16xf32>
    %c8_39 = arith.constant 8 : index
    %c0_40 = arith.constant 0 : index
    %102 = vector.load %arg11[%c8_39, %c0_40] : memref<16x32xf32, #tpu.memory_space<vmem>>, vector<8x16xf32>
    tpu.vector_store %arg11[%c8_39, %c0_40], %101 {strides = array<i32>} : memref<16x32xf32, #tpu.memory_space<vmem>>, vector<8x16xf32>,
    %103 = vector.extract_strided_slice %39 {offsets = [8, 16], sizes = [8, 16], strides = [1, 1]} : vector<16x32xbf16> to vector<8x16xbf16>
    %104 = vector.extract_strided_slice %41 {offsets = [8, 16], sizes = [8, 16], strides = [1, 1]} : vector<16x32xbf16> to vector<8x16xbf16>
    %cst_41 = arith.constant dense<0.000000e+00> : vector<8x8xf32>
    %105 = tpu.matmul %103, %104, %cst_41 {dimension_numbers = #tpu.dot_dimension_numbers<[1], [1], [0], [0], [0, 0, 1, 0], [], []>} : vector<8x16xbf16>, vector<8x16xbf16>, vector<8x8xf32> -> vector<8x8xf32>
    %106 = vector.broadcast %83 : vector<1x8xf32> to vector<8x8xf32>
    %107 = arith.addf %105, %106 : vector<8x8xf32>
    %cst_42 = arith.constant dense<0xFF800000> : vector<8xf32>
    %108 = vector.multi_reduction <maximumf>, %107, %cst_42 [1] : vector<8x8xf32> to vector<8xf32>
    %109 = vector.shape_cast %108 : vector<8xf32> to vector<8x1xf32>
    %110 = vector.broadcast %109 : vector<8x1xf32> to vector<8x8xf32>
    %111 = arith.subf %107, %110 : vector<8x8xf32>
    %112 = math.exp %111 : vector<8x8xf32>
    %cst_43 = arith.constant dense<0.000000e+00> : vector<8xf32>
    %113 = vector.multi_reduction <add>, %112, %cst_43 [1] : vector<8x8xf32> to vector<8xf32>
    %114 = vector.shape_cast %113 : vector<8xf32> to vector<8x1xf32>
    %115 = tpu.reciprocal %114 {approx = true} : vector<8x1xf32> -> vector<8x1xf32>
    %116 = vector.broadcast %115 : vector<8x1xf32> to vector<8x8xf32>
    %117 = arith.mulf %112, %116 : vector<8x8xf32>
    %118 = arith.truncf %117 : vector<8x8xf32> to vector<8x8xbf16>
    %119 = vector.extract_strided_slice %43 {offsets = [8, 16], sizes = [8, 16], strides = [1, 1]} : vector<16x32xbf16> to vector<8x16xbf16>
    %cst_44 = arith.constant dense<0.000000e+00> : vector<8x16xf32>
    %120 = tpu.matmul %118, %119, %cst_44 {dimension_numbers = #tpu.dot_dimension_numbers<[1], [0], [0], [1], [0, 0, 1, 1], [], []>} : vector<8x8xbf16>, vector<8x16xbf16>, vector<8x16xf32> -> vector<8x16xf32>
    %c8_45 = arith.constant 8 : index
    %c16_46 = arith.constant 16 : index
    %121 = vector.load %arg11[%c8_45, %c16_46] : memref<16x32xf32, #tpu.memory_space<vmem>>, vector<8x16xf32>
    tpu.vector_store %arg11[%c8_45, %c16_46], %120 {strides = array<i32>} : memref<16x32xf32, #tpu.memory_space<vmem>>, vector<8x16xf32>,
    %c0_47 = arith.constant 0 : index
    %c0_48 = arith.constant 0 : index
    %122 = vector.load %arg11[%c0_47, %c0_48] : memref<16x32xf32, #tpu.memory_space<vmem>>, vector<16x32xf32>
    %123 = arith.truncf %122 : vector<16x32xf32> to vector<16x32xbf16>
    %c0_49 = arith.constant 0 : index
    %c0_50 = arith.constant 0 : index
    %c0_51 = arith.constant 0 : index
    %124 = vector.load %arg3[%c0_49, %c0_50, %c0_51] : memref<2x32x32xbf16, #tpu.memory_space<vmem>>, vector<1x32x32xbf16>
    %125 = vector.shape_cast %124 : vector<1x32x32xbf16> to vector<32x32xbf16>
    %cst_52 = arith.constant dense<0.000000e+00> : vector<16x32xf32>
    %126 = tpu.matmul %123, %125, %cst_52 {dimension_numbers = #tpu.dot_dimension_numbers<[1], [0], [0], [1], [0, 0, 1, 1], [], []>} : vector<16x32xbf16>, vector<32x32xbf16>, vector<16x32xf32> -> vector<16x32xf32>
    %127 = vector.broadcast %25 : vector<1x32xf32> to vector<16x32xf32>
    %128 = arith.addf %126, %127 : vector<16x32xf32>
    %129 = arith.addf %24, %128 : vector<16x32xf32>
    %cst_53 = arith.constant dense<0.000000e+00> : vector<16xf32>
    %130 = vector.multi_reduction <add>, %129, %cst_53 [1] : vector<16x32xf32> to vector<16xf32>
    %131 = vector.shape_cast %130 : vector<16xf32> to vector<16x1xf32>
    %132 = arith.mulf %129, %129 : vector<16x32xf32>
    %cst_54 = arith.constant dense<0.000000e+00> : vector<16xf32>
    %133 = vector.multi_reduction <add>, %132, %cst_54 [1] : vector<16x32xf32> to vector<16xf32>
    %134 = vector.shape_cast %133 : vector<16xf32> to vector<16x1xf32>
    %cst_55 = arith.constant 3.125000e-02 : f32
    %135 = vector.broadcast %cst_55 : f32 to vector<16x1xf32>
    %136 = arith.mulf %131, %135 : vector<16x1xf32>
    %cst_56 = arith.constant 3.125000e-02 : f32
    %137 = vector.broadcast %cst_56 : f32 to vector<16x1xf32>
    %138 = arith.mulf %134, %137 : vector<16x1xf32>
    %139 = arith.mulf %136, %136 : vector<16x1xf32>
    %140 = arith.subf %138, %139 : vector<16x1xf32>
    %141 = vector.broadcast %136 : vector<16x1xf32> to vector<16x32xf32>
    %142 = arith.subf %129, %141 : vector<16x32xf32>
    %cst_57 = arith.constant 9.99999996E-13 : f32
    %143 = vector.broadcast %cst_57 : f32 to vector<16x1xf32>
    %144 = arith.addf %140, %143 : vector<16x1xf32>
    %145 = math.rsqrt %144 : vector<16x1xf32>
    %146 = vector.broadcast %145 : vector<16x1xf32> to vector<16x32xf32>
    %147 = arith.mulf %142, %146 : vector<16x32xf32>
    %148 = vector.broadcast %26 : vector<1x32xf32> to vector<16x32xf32>
    %149 = arith.mulf %147, %148 : vector<16x32xf32>
    %150 = vector.broadcast %27 : vector<1x32xf32> to vector<16x32xf32>
    %151 = arith.addf %149, %150 : vector<16x32xf32>
    %152 = arith.truncf %151 : vector<16x32xf32> to vector<16x32xbf16>
    %c0_58 = arith.constant 0 : index
    %c0_59 = arith.constant 0 : index
    %c0_60 = arith.constant 0 : index
    %153 = vector.load %arg4[%c0_58, %c0_59, %c0_60] : memref<2x32x128xbf16, #tpu.memory_space<vmem>>, vector<1x32x128xbf16>
    %154 = vector.shape_cast %153 : vector<1x32x128xbf16> to vector<32x128xbf16>
    %cst_61 = arith.constant dense<0.000000e+00> : vector<16x128xf32>
    %155 = tpu.matmul %152, %154, %cst_61 {dimension_numbers = #tpu.dot_dimension_numbers<[1], [0], [0], [1], [0, 0, 1, 1], [], []>} : vector<16x32xbf16>, vector<32x128xbf16>, vector<16x128xf32> -> vector<16x128xf32>
    %c0_62 = arith.constant 0 : index
    %c0_63 = arith.constant 0 : index
    %156 = vector.load %arg8[%c0_62, %c0_63] : memref<2x128xf32, #tpu.memory_space<vmem>>, vector<1x128xf32>
    %157 = vector.broadcast %156 : vector<1x128xf32> to vector<16x128xf32>
    %158 = arith.addf %155, %157 : vector<16x128xf32>
    %cst_64 = arith.constant 5.000000e-01 : f32
    %159 = vector.broadcast %cst_64 : f32 to vector<16x128xf32>
    %160 = arith.mulf %159, %158 : vector<16x128xf32>
    %cst_65 = arith.constant 0.707106769 : f32
    %161 = vector.broadcast %cst_65 : f32 to vector<16x128xf32>
    %162 = arith.mulf %158, %161 : vector<16x128xf32>
    %163 = math.absf %162 : vector<16x128xf32>
    %cst_66 = arith.constant 0.327591091 : f32
    %164 = vector.broadcast %cst_66 : f32 to vector<16x128xf32>
    %165 = arith.mulf %164, %163 : vector<16x128xf32>
    %cst_67 = arith.constant 1.000000e+00 : f32
    %166 = vector.broadcast %cst_67 : f32 to vector<16x128xf32>
    %167 = arith.addf %166, %165 : vector<16x128xf32>
    %cst_68 = arith.constant 1.000000e+00 : f32
    %168 = vector.broadcast %cst_68 : f32 to vector<16x128xf32>
    %169 = arith.divf %168, %167 : vector<16x128xf32>
    %cst_69 = arith.constant 1.06140542 : f32
    %170 = vector.broadcast %cst_69 : f32 to vector<16x128xf32>
    %171 = arith.mulf %170, %169 : vector<16x128xf32>
    %cst_70 = arith.constant -1.45315206 : f32
    %172 = vector.broadcast %cst_70 : f32 to vector<16x128xf32>
    %173 = arith.addf %171, %172 : vector<16x128xf32>
    %174 = arith.mulf %173, %169 : vector<16x128xf32>
    %cst_71 = arith.constant 1.42141378 : f32
    %175 = vector.broadcast %cst_71 : f32 to vector<16x128xf32>
    %176 = arith.addf %174, %175 : vector<16x128xf32>
    %177 = arith.mulf %176, %169 : vector<16x128xf32>
    %cst_72 = arith.constant -0.284496725 : f32
    %178 = vector.broadcast %cst_72 : f32 to vector<16x128xf32>
    %179 = arith.addf %177, %178 : vector<16x128xf32>
    %180 = arith.mulf %179, %169 : vector<16x128xf32>
    %cst_73 = arith.constant 0.254829586 : f32
    %181 = vector.broadcast %cst_73 : f32 to vector<16x128xf32>
    %182 = arith.addf %180, %181 : vector<16x128xf32>
    %183 = arith.mulf %182, %169 : vector<16x128xf32>
    %cst_74 = arith.constant 0.000000e+00 : f32
    %184 = vector.broadcast %cst_74 : f32 to vector<16x128xf32>
    %185 = arith.subf %184, %163 : vector<16x128xf32>
    %186 = arith.mulf %185, %163 : vector<16x128xf32>
    %187 = math.exp %186 : vector<16x128xf32>
    %188 = arith.mulf %183, %187 : vector<16x128xf32>
    %cst_75 = arith.constant 1.000000e+00 : f32
    %189 = vector.broadcast %cst_75 : f32 to vector<16x128xf32>
    %190 = arith.subf %189, %188 : vector<16x128xf32>
    %cst_76 = arith.constant 0.000000e+00 : f32
    %191 = vector.broadcast %cst_76 : f32 to vector<16x128xf32>
    %192 = arith.cmpf oge, %162, %191 : vector<16x128xf32>
    %cst_77 = arith.constant 0.000000e+00 : f32
    %193 = vector.broadcast %cst_77 : f32 to vector<16x128xf32>
    %194 = arith.subf %193, %190 : vector<16x128xf32>
    %195 = arith.select %192, %190, %194 : vector<16x128xi1>, vector<16x128xf32>
    %cst_78 = arith.constant 1.000000e+00 : f32
    %196 = vector.broadcast %cst_78 : f32 to vector<16x128xf32>
    %197 = arith.addf %196, %195 : vector<16x128xf32>
    %198 = arith.mulf %160, %197 : vector<16x128xf32>
    %199 = arith.truncf %198 : vector<16x128xf32> to vector<16x128xbf16>
    %c0_79 = arith.constant 0 : index
    %c0_80 = arith.constant 0 : index
    %c0_81 = arith.constant 0 : index
    %200 = vector.load %arg5[%c0_79, %c0_80, %c0_81] : memref<2x128x32xbf16, #tpu.memory_space<vmem>>, vector<1x128x32xbf16>
    %201 = vector.shape_cast %200 : vector<1x128x32xbf16> to vector<128x32xbf16>
    %cst_82 = arith.constant dense<0.000000e+00> : vector<16x32xf32>
    %202 = tpu.matmul %199, %201, %cst_82 {dimension_numbers = #tpu.dot_dimension_numbers<[1], [0], [0], [1], [0, 0, 1, 1], [], []>} : vector<16x128xbf16>, vector<128x32xbf16>, vector<16x32xf32> -> vector<16x32xf32>
    %203 = vector.broadcast %28 : vector<1x32xf32> to vector<16x32xf32>
    %204 = arith.addf %202, %203 : vector<16x32xf32>
    %205 = arith.addf %151, %204 : vector<16x32xf32>
    %cst_83 = arith.constant dense<0.000000e+00> : vector<16xf32>
    %206 = vector.multi_reduction <add>, %205, %cst_83 [1] : vector<16x32xf32> to vector<16xf32>
    %207 = vector.shape_cast %206 : vector<16xf32> to vector<16x1xf32>
    %208 = arith.mulf %205, %205 : vector<16x32xf32>
    %cst_84 = arith.constant dense<0.000000e+00> : vector<16xf32>
    %209 = vector.multi_reduction <add>, %208, %cst_84 [1] : vector<16x32xf32> to vector<16xf32>
    %210 = vector.shape_cast %209 : vector<16xf32> to vector<16x1xf32>
    %cst_85 = arith.constant 3.125000e-02 : f32
    %211 = vector.broadcast %cst_85 : f32 to vector<16x1xf32>
    %212 = arith.mulf %207, %211 : vector<16x1xf32>
    %cst_86 = arith.constant 3.125000e-02 : f32
    %213 = vector.broadcast %cst_86 : f32 to vector<16x1xf32>
    %214 = arith.mulf %210, %213 : vector<16x1xf32>
    %215 = arith.mulf %212, %212 : vector<16x1xf32>
    %216 = arith.subf %214, %215 : vector<16x1xf32>
    %217 = vector.broadcast %212 : vector<16x1xf32> to vector<16x32xf32>
    %218 = arith.subf %205, %217 : vector<16x32xf32>
    %cst_87 = arith.constant 9.99999996E-13 : f32
    %219 = vector.broadcast %cst_87 : f32 to vector<16x1xf32>
    %220 = arith.addf %216, %219 : vector<16x1xf32>
    %221 = math.rsqrt %220 : vector<16x1xf32>
    %222 = vector.broadcast %221 : vector<16x1xf32> to vector<16x32xf32>
    %223 = arith.mulf %218, %222 : vector<16x32xf32>
    %224 = vector.broadcast %29 : vector<1x32xf32> to vector<16x32xf32>
    %225 = arith.mulf %223, %224 : vector<16x32xf32>
    %226 = vector.broadcast %30 : vector<1x32xf32> to vector<16x32xf32>
    %227 = arith.addf %225, %226 : vector<16x32xf32>
    %c9 = arith.constant 9 : index
    %c0_88 = arith.constant 0 : index
    %228 = vector.load %arg6[%c9, %c0_88] : memref<15x32xf32, #tpu.memory_space<vmem>>, vector<1x32xf32>
    %c10 = arith.constant 10 : index
    %c0_89 = arith.constant 0 : index
    %229 = vector.load %arg6[%c10, %c0_89] : memref<15x32xf32, #tpu.memory_space<vmem>>, vector<1x32xf32>
    %c11 = arith.constant 11 : index
    %c0_90 = arith.constant 0 : index
    %230 = vector.load %arg6[%c11, %c0_90] : memref<15x32xf32, #tpu.memory_space<vmem>>, vector<1x32xf32>
    %c12 = arith.constant 12 : index
    %c0_91 = arith.constant 0 : index
    %231 = vector.load %arg6[%c12, %c0_91] : memref<15x32xf32, #tpu.memory_space<vmem>>, vector<1x32xf32>
    %c13 = arith.constant 13 : index
    %c0_92 = arith.constant 0 : index
    %232 = vector.load %arg6[%c13, %c0_92] : memref<15x32xf32, #tpu.memory_space<vmem>>, vector<1x32xf32>
    %c14 = arith.constant 14 : index
    %c0_93 = arith.constant 0 : index
    %233 = vector.load %arg6[%c14, %c0_93] : memref<15x32xf32, #tpu.memory_space<vmem>>, vector<1x32xf32>
    %234 = arith.truncf %227 : vector<16x32xf32> to vector<16x32xbf16>
    %c1_94 = arith.constant 1 : index
    %c0_95 = arith.constant 0 : index
    %c0_96 = arith.constant 0 : index
    %235 = vector.load %arg2[%c1_94, %c0_95, %c0_96] : memref<2x32x96xbf16, #tpu.memory_space<vmem>>, vector<1x32x96xbf16>
    %236 = vector.shape_cast %235 : vector<1x32x96xbf16> to vector<32x96xbf16>
    %cst_97 = arith.constant dense<0.000000e+00> : vector<16x96xf32>
    %237 = tpu.matmul %234, %236, %cst_97 {dimension_numbers = #tpu.dot_dimension_numbers<[1], [0], [0], [1], [0, 0, 1, 1], [], []>} : vector<16x32xbf16>, vector<32x96xbf16>, vector<16x96xf32> -> vector<16x96xf32>
    %c1_98 = arith.constant 1 : index
    %c0_99 = arith.constant 0 : index
    %238 = vector.load %arg7[%c1_98, %c0_99] : memref<2x96xf32, #tpu.memory_space<vmem>>, vector<1x96xf32>
    %239 = vector.broadcast %238 : vector<1x96xf32> to vector<16x96xf32>
    %240 = arith.addf %237, %239 : vector<16x96xf32>
    %241 = vector.extract_strided_slice %240 {offsets = [0, 0], sizes = [16, 32], strides = [1, 1]} : vector<16x96xf32> to vector<16x32xf32>
    %242 = arith.truncf %241 : vector<16x32xf32> to vector<16x32xbf16>
    %243 = vector.extract_strided_slice %240 {offsets = [0, 32], sizes = [16, 32], strides = [1, 1]} : vector<16x96xf32> to vector<16x32xf32>
    %244 = arith.truncf %243 : vector<16x32xf32> to vector<16x32xbf16>
    %245 = vector.extract_strided_slice %240 {offsets = [0, 64], sizes = [16, 32], strides = [1, 1]} : vector<16x96xf32> to vector<16x32xf32>
    %246 = arith.truncf %245 : vector<16x32xf32> to vector<16x32xbf16>
    %c0_100 = arith.constant 0 : index
    %c0_101 = arith.constant 0 : index
    %247 = vector.load %arg1[%c0_100, %c0_101] : memref<2x8xf32, #tpu.memory_space<vmem>>, vector<1x8xf32>
    %248 = vector.extract_strided_slice %242 {offsets = [0, 0], sizes = [8, 16], strides = [1, 1]} : vector<16x32xbf16> to vector<8x16xbf16>
    %249 = vector.extract_strided_slice %244 {offsets = [0, 0], sizes = [8, 16], strides = [1, 1]} : vector<16x32xbf16> to vector<8x16xbf16>
    %cst_102 = arith.constant dense<0.000000e+00> : vector<8x8xf32>
    %250 = tpu.matmul %248, %249, %cst_102 {dimension_numbers = #tpu.dot_dimension_numbers<[1], [1], [0], [0], [0, 0, 1, 0], [], []>} : vector<8x16xbf16>, vector<8x16xbf16>, vector<8x8xf32> -> vector<8x8xf32>
    %251 = vector.broadcast %247 : vector<1x8xf32> to vector<8x8xf32>
    %252 = arith.addf %250, %251 : vector<8x8xf32>
    %cst_103 = arith.constant dense<0xFF800000> : vector<8xf32>
    %253 = vector.multi_reduction <maximumf>, %252, %cst_103 [1] : vector<8x8xf32> to vector<8xf32>
    %254 = vector.shape_cast %253 : vector<8xf32> to vector<8x1xf32>
    %255 = vector.broadcast %254 : vector<8x1xf32> to vector<8x8xf32>
    %256 = arith.subf %252, %255 : vector<8x8xf32>
    %257 = math.exp %256 : vector<8x8xf32>
    %cst_104 = arith.constant dense<0.000000e+00> : vector<8xf32>
    %258 = vector.multi_reduction <add>, %257, %cst_104 [1] : vector<8x8xf32> to vector<8xf32>
    %259 = vector.shape_cast %258 : vector<8xf32> to vector<8x1xf32>
    %260 = tpu.reciprocal %259 {approx = true} : vector<8x1xf32> -> vector<8x1xf32>
    %261 = vector.broadcast %260 : vector<8x1xf32> to vector<8x8xf32>
    %262 = arith.mulf %257, %261 : vector<8x8xf32>
    %263 = arith.truncf %262 : vector<8x8xf32> to vector<8x8xbf16>
    %264 = vector.extract_strided_slice %246 {offsets = [0, 0], sizes = [8, 16], strides = [1, 1]} : vector<16x32xbf16> to vector<8x16xbf16>
    %cst_105 = arith.constant dense<0.000000e+00> : vector<8x16xf32>
    %265 = tpu.matmul %263, %264, %cst_105 {dimension_numbers = #tpu.dot_dimension_numbers<[1], [0], [0], [1], [0, 0, 1, 1], [], []>} : vector<8x8xbf16>, vector<8x16xbf16>, vector<8x16xf32> -> vector<8x16xf32>
    %c0_106 = arith.constant 0 : index
    %c0_107 = arith.constant 0 : index
    %266 = vector.load %arg11[%c0_106, %c0_107] : memref<16x32xf32, #tpu.memory_space<vmem>>, vector<8x16xf32>
    tpu.vector_store %arg11[%c0_106, %c0_107], %265 {strides = array<i32>} : memref<16x32xf32, #tpu.memory_space<vmem>>, vector<8x16xf32>,
    %267 = vector.extract_strided_slice %242 {offsets = [0, 16], sizes = [8, 16], strides = [1, 1]} : vector<16x32xbf16> to vector<8x16xbf16>
    %268 = vector.extract_strided_slice %244 {offsets = [0, 16], sizes = [8, 16], strides = [1, 1]} : vector<16x32xbf16> to vector<8x16xbf16>
    %cst_108 = arith.constant dense<0.000000e+00> : vector<8x8xf32>
    %269 = tpu.matmul %267, %268, %cst_108 {dimension_numbers = #tpu.dot_dimension_numbers<[1], [1], [0], [0], [0, 0, 1, 0], [], []>} : vector<8x16xbf16>, vector<8x16xbf16>, vector<8x8xf32> -> vector<8x8xf32>
    %270 = vector.broadcast %247 : vector<1x8xf32> to vector<8x8xf32>
    %271 = arith.addf %269, %270 : vector<8x8xf32>
    %cst_109 = arith.constant dense<0xFF800000> : vector<8xf32>
    %272 = vector.multi_reduction <maximumf>, %271, %cst_109 [1] : vector<8x8xf32> to vector<8xf32>
    %273 = vector.shape_cast %272 : vector<8xf32> to vector<8x1xf32>
    %274 = vector.broadcast %273 : vector<8x1xf32> to vector<8x8xf32>
    %275 = arith.subf %271, %274 : vector<8x8xf32>
    %276 = math.exp %275 : vector<8x8xf32>
    %cst_110 = arith.constant dense<0.000000e+00> : vector<8xf32>
    %277 = vector.multi_reduction <add>, %276, %cst_110 [1] : vector<8x8xf32> to vector<8xf32>
    %278 = vector.shape_cast %277 : vector<8xf32> to vector<8x1xf32>
    %279 = tpu.reciprocal %278 {approx = true} : vector<8x1xf32> -> vector<8x1xf32>
    %280 = vector.broadcast %279 : vector<8x1xf32> to vector<8x8xf32>
    %281 = arith.mulf %276, %280 : vector<8x8xf32>
    %282 = arith.truncf %281 : vector<8x8xf32> to vector<8x8xbf16>
    %283 = vector.extract_strided_slice %246 {offsets = [0, 16], sizes = [8, 16], strides = [1, 1]} : vector<16x32xbf16> to vector<8x16xbf16>
    %cst_111 = arith.constant dense<0.000000e+00> : vector<8x16xf32>
    %284 = tpu.matmul %282, %283, %cst_111 {dimension_numbers = #tpu.dot_dimension_numbers<[1], [0], [0], [1], [0, 0, 1, 1], [], []>} : vector<8x8xbf16>, vector<8x16xbf16>, vector<8x16xf32> -> vector<8x16xf32>
    %c0_112 = arith.constant 0 : index
    %c16_113 = arith.constant 16 : index
    %285 = vector.load %arg11[%c0_112, %c16_113] : memref<16x32xf32, #tpu.memory_space<vmem>>, vector<8x16xf32>
    tpu.vector_store %arg11[%c0_112, %c16_113], %284 {strides = array<i32>} : memref<16x32xf32, #tpu.memory_space<vmem>>, vector<8x16xf32>,
    %c1_114 = arith.constant 1 : index
    %c0_115 = arith.constant 0 : index
    %286 = vector.load %arg1[%c1_114, %c0_115] : memref<2x8xf32, #tpu.memory_space<vmem>>, vector<1x8xf32>
    %287 = vector.extract_strided_slice %242 {offsets = [8, 0], sizes = [8, 16], strides = [1, 1]} : vector<16x32xbf16> to vector<8x16xbf16>
    %288 = vector.extract_strided_slice %244 {offsets = [8, 0], sizes = [8, 16], strides = [1, 1]} : vector<16x32xbf16> to vector<8x16xbf16>
    %cst_116 = arith.constant dense<0.000000e+00> : vector<8x8xf32>
    %289 = tpu.matmul %287, %288, %cst_116 {dimension_numbers = #tpu.dot_dimension_numbers<[1], [1], [0], [0], [0, 0, 1, 0], [], []>} : vector<8x16xbf16>, vector<8x16xbf16>, vector<8x8xf32> -> vector<8x8xf32>
    %290 = vector.broadcast %286 : vector<1x8xf32> to vector<8x8xf32>
    %291 = arith.addf %289, %290 : vector<8x8xf32>
    %cst_117 = arith.constant dense<0xFF800000> : vector<8xf32>
    %292 = vector.multi_reduction <maximumf>, %291, %cst_117 [1] : vector<8x8xf32> to vector<8xf32>
    %293 = vector.shape_cast %292 : vector<8xf32> to vector<8x1xf32>
    %294 = vector.broadcast %293 : vector<8x1xf32> to vector<8x8xf32>
    %295 = arith.subf %291, %294 : vector<8x8xf32>
    %296 = math.exp %295 : vector<8x8xf32>
    %cst_118 = arith.constant dense<0.000000e+00> : vector<8xf32>
    %297 = vector.multi_reduction <add>, %296, %cst_118 [1] : vector<8x8xf32> to vector<8xf32>
    %298 = vector.shape_cast %297 : vector<8xf32> to vector<8x1xf32>
    %299 = tpu.reciprocal %298 {approx = true} : vector<8x1xf32> -> vector<8x1xf32>
    %300 = vector.broadcast %299 : vector<8x1xf32> to vector<8x8xf32>
    %301 = arith.mulf %296, %300 : vector<8x8xf32>
    %302 = arith.truncf %301 : vector<8x8xf32> to vector<8x8xbf16>
    %303 = vector.extract_strided_slice %246 {offsets = [8, 0], sizes = [8, 16], strides = [1, 1]} : vector<16x32xbf16> to vector<8x16xbf16>
    %cst_119 = arith.constant dense<0.000000e+00> : vector<8x16xf32>
    %304 = tpu.matmul %302, %303, %cst_119 {dimension_numbers = #tpu.dot_dimension_numbers<[1], [0], [0], [1], [0, 0, 1, 1], [], []>} : vector<8x8xbf16>, vector<8x16xbf16>, vector<8x16xf32> -> vector<8x16xf32>
    %c8_120 = arith.constant 8 : index
    %c0_121 = arith.constant 0 : index
    %305 = vector.load %arg11[%c8_120, %c0_121] : memref<16x32xf32, #tpu.memory_space<vmem>>, vector<8x16xf32>
    tpu.vector_store %arg11[%c8_120, %c0_121], %304 {strides = array<i32>} : memref<16x32xf32, #tpu.memory_space<vmem>>, vector<8x16xf32>,
    %306 = vector.extract_strided_slice %242 {offsets = [8, 16], sizes = [8, 16], strides = [1, 1]} : vector<16x32xbf16> to vector<8x16xbf16>
    %307 = vector.extract_strided_slice %244 {offsets = [8, 16], sizes = [8, 16], strides = [1, 1]} : vector<16x32xbf16> to vector<8x16xbf16>
    %cst_122 = arith.constant dense<0.000000e+00> : vector<8x8xf32>
    %308 = tpu.matmul %306, %307, %cst_122 {dimension_numbers = #tpu.dot_dimension_numbers<[1], [1], [0], [0], [0, 0, 1, 0], [], []>} : vector<8x16xbf16>, vector<8x16xbf16>, vector<8x8xf32> -> vector<8x8xf32>
    %309 = vector.broadcast %286 : vector<1x8xf32> to vector<8x8xf32>
    %310 = arith.addf %308, %309 : vector<8x8xf32>
    %cst_123 = arith.constant dense<0xFF800000> : vector<8xf32>
    %311 = vector.multi_reduction <maximumf>, %310, %cst_123 [1] : vector<8x8xf32> to vector<8xf32>
    %312 = vector.shape_cast %311 : vector<8xf32> to vector<8x1xf32>
    %313 = vector.broadcast %312 : vector<8x1xf32> to vector<8x8xf32>
    %314 = arith.subf %310, %313 : vector<8x8xf32>
    %315 = math.exp %314 : vector<8x8xf32>
    %cst_124 = arith.constant dense<0.000000e+00> : vector<8xf32>
    %316 = vector.multi_reduction <add>, %315, %cst_124 [1] : vector<8x8xf32> to vector<8xf32>
    %317 = vector.shape_cast %316 : vector<8xf32> to vector<8x1xf32>
    %318 = tpu.reciprocal %317 {approx = true} : vector<8x1xf32> -> vector<8x1xf32>
    %319 = vector.broadcast %318 : vector<8x1xf32> to vector<8x8xf32>
    %320 = arith.mulf %315, %319 : vector<8x8xf32>
    %321 = arith.truncf %320 : vector<8x8xf32> to vector<8x8xbf16>
    %322 = vector.extract_strided_slice %246 {offsets = [8, 16], sizes = [8, 16], strides = [1, 1]} : vector<16x32xbf16> to vector<8x16xbf16>
    %cst_125 = arith.constant dense<0.000000e+00> : vector<8x16xf32>
    %323 = tpu.matmul %321, %322, %cst_125 {dimension_numbers = #tpu.dot_dimension_numbers<[1], [0], [0], [1], [0, 0, 1, 1], [], []>} : vector<8x8xbf16>, vector<8x16xbf16>, vector<8x16xf32> -> vector<8x16xf32>
    %c8_126 = arith.constant 8 : index
    %c16_127 = arith.constant 16 : index
    %324 = vector.load %arg11[%c8_126, %c16_127] : memref<16x32xf32, #tpu.memory_space<vmem>>, vector<8x16xf32>
    tpu.vector_store %arg11[%c8_126, %c16_127], %323 {strides = array<i32>} : memref<16x32xf32, #tpu.memory_space<vmem>>, vector<8x16xf32>,
    %c0_128 = arith.constant 0 : index
    %c0_129 = arith.constant 0 : index
    %325 = vector.load %arg11[%c0_128, %c0_129] : memref<16x32xf32, #tpu.memory_space<vmem>>, vector<16x32xf32>
    %326 = arith.truncf %325 : vector<16x32xf32> to vector<16x32xbf16>
    %c1_130 = arith.constant 1 : index
    %c0_131 = arith.constant 0 : index
    %c0_132 = arith.constant 0 : index
    %327 = vector.load %arg3[%c1_130, %c0_131, %c0_132] : memref<2x32x32xbf16, #tpu.memory_space<vmem>>, vector<1x32x32xbf16>
    %328 = vector.shape_cast %327 : vector<1x32x32xbf16> to vector<32x32xbf16>
    %cst_133 = arith.constant dense<0.000000e+00> : vector<16x32xf32>
    %329 = tpu.matmul %326, %328, %cst_133 {dimension_numbers = #tpu.dot_dimension_numbers<[1], [0], [0], [1], [0, 0, 1, 1], [], []>} : vector<16x32xbf16>, vector<32x32xbf16>, vector<16x32xf32> -> vector<16x32xf32>
    %330 = vector.broadcast %228 : vector<1x32xf32> to vector<16x32xf32>
    %331 = arith.addf %329, %330 : vector<16x32xf32>
    %332 = arith.addf %227, %331 : vector<16x32xf32>
    %cst_134 = arith.constant dense<0.000000e+00> : vector<16xf32>
    %333 = vector.multi_reduction <add>, %332, %cst_134 [1] : vector<16x32xf32> to vector<16xf32>
    %334 = vector.shape_cast %333 : vector<16xf32> to vector<16x1xf32>
    %335 = arith.mulf %332, %332 : vector<16x32xf32>
    %cst_135 = arith.constant dense<0.000000e+00> : vector<16xf32>
    %336 = vector.multi_reduction <add>, %335, %cst_135 [1] : vector<16x32xf32> to vector<16xf32>
    %337 = vector.shape_cast %336 : vector<16xf32> to vector<16x1xf32>
    %cst_136 = arith.constant 3.125000e-02 : f32
    %338 = vector.broadcast %cst_136 : f32 to vector<16x1xf32>
    %339 = arith.mulf %334, %338 : vector<16x1xf32>
    %cst_137 = arith.constant 3.125000e-02 : f32
    %340 = vector.broadcast %cst_137 : f32 to vector<16x1xf32>
    %341 = arith.mulf %337, %340 : vector<16x1xf32>
    %342 = arith.mulf %339, %339 : vector<16x1xf32>
    %343 = arith.subf %341, %342 : vector<16x1xf32>
    %344 = vector.broadcast %339 : vector<16x1xf32> to vector<16x32xf32>
    %345 = arith.subf %332, %344 : vector<16x32xf32>
    %cst_138 = arith.constant 9.99999996E-13 : f32
    %346 = vector.broadcast %cst_138 : f32 to vector<16x1xf32>
    %347 = arith.addf %343, %346 : vector<16x1xf32>
    %348 = math.rsqrt %347 : vector<16x1xf32>
    %349 = vector.broadcast %348 : vector<16x1xf32> to vector<16x32xf32>
    %350 = arith.mulf %345, %349 : vector<16x32xf32>
    %351 = vector.broadcast %229 : vector<1x32xf32> to vector<16x32xf32>
    %352 = arith.mulf %350, %351 : vector<16x32xf32>
    %353 = vector.broadcast %230 : vector<1x32xf32> to vector<16x32xf32>
    %354 = arith.addf %352, %353 : vector<16x32xf32>
    %355 = arith.truncf %354 : vector<16x32xf32> to vector<16x32xbf16>
    %c1_139 = arith.constant 1 : index
    %c0_140 = arith.constant 0 : index
    %c0_141 = arith.constant 0 : index
    %356 = vector.load %arg4[%c1_139, %c0_140, %c0_141] : memref<2x32x128xbf16, #tpu.memory_space<vmem>>, vector<1x32x128xbf16>
    %357 = vector.shape_cast %356 : vector<1x32x128xbf16> to vector<32x128xbf16>
    %cst_142 = arith.constant dense<0.000000e+00> : vector<16x128xf32>
    %358 = tpu.matmul %355, %357, %cst_142 {dimension_numbers = #tpu.dot_dimension_numbers<[1], [0], [0], [1], [0, 0, 1, 1], [], []>} : vector<16x32xbf16>, vector<32x128xbf16>, vector<16x128xf32> -> vector<16x128xf32>
    %c1_143 = arith.constant 1 : index
    %c0_144 = arith.constant 0 : index
    %359 = vector.load %arg8[%c1_143, %c0_144] : memref<2x128xf32, #tpu.memory_space<vmem>>, vector<1x128xf32>
    %360 = vector.broadcast %359 : vector<1x128xf32> to vector<16x128xf32>
    %361 = arith.addf %358, %360 : vector<16x128xf32>
    %cst_145 = arith.constant 5.000000e-01 : f32
    %362 = vector.broadcast %cst_145 : f32 to vector<16x128xf32>
    %363 = arith.mulf %362, %361 : vector<16x128xf32>
    %cst_146 = arith.constant 0.707106769 : f32
    %364 = vector.broadcast %cst_146 : f32 to vector<16x128xf32>
    %365 = arith.mulf %361, %364 : vector<16x128xf32>
    %366 = math.absf %365 : vector<16x128xf32>
    %cst_147 = arith.constant 0.327591091 : f32
    %367 = vector.broadcast %cst_147 : f32 to vector<16x128xf32>
    %368 = arith.mulf %367, %366 : vector<16x128xf32>
    %cst_148 = arith.constant 1.000000e+00 : f32
    %369 = vector.broadcast %cst_148 : f32 to vector<16x128xf32>
    %370 = arith.addf %369, %368 : vector<16x128xf32>
    %cst_149 = arith.constant 1.000000e+00 : f32
    %371 = vector.broadcast %cst_149 : f32 to vector<16x128xf32>
    %372 = arith.divf %371, %370 : vector<16x128xf32>
    %cst_150 = arith.constant 1.06140542 : f32
    %373 = vector.broadcast %cst_150 : f32 to vector<16x128xf32>
    %374 = arith.mulf %373, %372 : vector<16x128xf32>
    %cst_151 = arith.constant -1.45315206 : f32
    %375 = vector.broadcast %cst_151 : f32 to vector<16x128xf32>
    %376 = arith.addf %374, %375 : vector<16x128xf32>
    %377 = arith.mulf %376, %372 : vector<16x128xf32>
    %cst_152 = arith.constant 1.42141378 : f32
    %378 = vector.broadcast %cst_152 : f32 to vector<16x128xf32>
    %379 = arith.addf %377, %378 : vector<16x128xf32>
    %380 = arith.mulf %379, %372 : vector<16x128xf32>
    %cst_153 = arith.constant -0.284496725 : f32
    %381 = vector.broadcast %cst_153 : f32 to vector<16x128xf32>
    %382 = arith.addf %380, %381 : vector<16x128xf32>
    %383 = arith.mulf %382, %372 : vector<16x128xf32>
    %cst_154 = arith.constant 0.254829586 : f32
    %384 = vector.broadcast %cst_154 : f32 to vector<16x128xf32>
    %385 = arith.addf %383, %384 : vector<16x128xf32>
    %386 = arith.mulf %385, %372 : vector<16x128xf32>
    %cst_155 = arith.constant 0.000000e+00 : f32
    %387 = vector.broadcast %cst_155 : f32 to vector<16x128xf32>
    %388 = arith.subf %387, %366 : vector<16x128xf32>
    %389 = arith.mulf %388, %366 : vector<16x128xf32>
    %390 = math.exp %389 : vector<16x128xf32>
    %391 = arith.mulf %386, %390 : vector<16x128xf32>
    %cst_156 = arith.constant 1.000000e+00 : f32
    %392 = vector.broadcast %cst_156 : f32 to vector<16x128xf32>
    %393 = arith.subf %392, %391 : vector<16x128xf32>
    %cst_157 = arith.constant 0.000000e+00 : f32
    %394 = vector.broadcast %cst_157 : f32 to vector<16x128xf32>
    %395 = arith.cmpf oge, %365, %394 : vector<16x128xf32>
    %cst_158 = arith.constant 0.000000e+00 : f32
    %396 = vector.broadcast %cst_158 : f32 to vector<16x128xf32>
    %397 = arith.subf %396, %393 : vector<16x128xf32>
    %398 = arith.select %395, %393, %397 : vector<16x128xi1>, vector<16x128xf32>
    %cst_159 = arith.constant 1.000000e+00 : f32
    %399 = vector.broadcast %cst_159 : f32 to vector<16x128xf32>
    %400 = arith.addf %399, %398 : vector<16x128xf32>
    %401 = arith.mulf %363, %400 : vector<16x128xf32>
    %402 = arith.truncf %401 : vector<16x128xf32> to vector<16x128xbf16>
    %c1_160 = arith.constant 1 : index
    %c0_161 = arith.constant 0 : index
    %c0_162 = arith.constant 0 : index
    %403 = vector.load %arg5[%c1_160, %c0_161, %c0_162] : memref<2x128x32xbf16, #tpu.memory_space<vmem>>, vector<1x128x32xbf16>
    %404 = vector.shape_cast %403 : vector<1x128x32xbf16> to vector<128x32xbf16>
    %cst_163 = arith.constant dense<0.000000e+00> : vector<16x32xf32>
    %405 = tpu.matmul %402, %404, %cst_163 {dimension_numbers = #tpu.dot_dimension_numbers<[1], [0], [0], [1], [0, 0, 1, 1], [], []>} : vector<16x128xbf16>, vector<128x32xbf16>, vector<16x32xf32> -> vector<16x32xf32>
    %406 = vector.broadcast %231 : vector<1x32xf32> to vector<16x32xf32>
    %407 = arith.addf %405, %406 : vector<16x32xf32>
    %408 = arith.addf %354, %407 : vector<16x32xf32>
    %cst_164 = arith.constant dense<0.000000e+00> : vector<16xf32>
    %409 = vector.multi_reduction <add>, %408, %cst_164 [1] : vector<16x32xf32> to vector<16xf32>
    %410 = vector.shape_cast %409 : vector<16xf32> to vector<16x1xf32>
    %411 = arith.mulf %408, %408 : vector<16x32xf32>
    %cst_165 = arith.constant dense<0.000000e+00> : vector<16xf32>
    %412 = vector.multi_reduction <add>, %411, %cst_165 [1] : vector<16x32xf32> to vector<16xf32>
    %413 = vector.shape_cast %412 : vector<16xf32> to vector<16x1xf32>
    %cst_166 = arith.constant 3.125000e-02 : f32
    %414 = vector.broadcast %cst_166 : f32 to vector<16x1xf32>
    %415 = arith.mulf %410, %414 : vector<16x1xf32>
    %cst_167 = arith.constant 3.125000e-02 : f32
    %416 = vector.broadcast %cst_167 : f32 to vector<16x1xf32>
    %417 = arith.mulf %413, %416 : vector<16x1xf32>
    %418 = arith.mulf %415, %415 : vector<16x1xf32>
    %419 = arith.subf %417, %418 : vector<16x1xf32>
    %420 = vector.broadcast %415 : vector<16x1xf32> to vector<16x32xf32>
    %421 = arith.subf %408, %420 : vector<16x32xf32>
    %cst_168 = arith.constant 9.99999996E-13 : f32
    %422 = vector.broadcast %cst_168 : f32 to vector<16x1xf32>
    %423 = arith.addf %419, %422 : vector<16x1xf32>
    %424 = math.rsqrt %423 : vector<16x1xf32>
    %425 = vector.broadcast %424 : vector<16x1xf32> to vector<16x32xf32>
    %426 = arith.mulf %421, %425 : vector<16x32xf32>
    %427 = vector.broadcast %232 : vector<1x32xf32> to vector<16x32xf32>
    %428 = arith.mulf %426, %427 : vector<16x32xf32>
    %429 = vector.broadcast %233 : vector<1x32xf32> to vector<16x32xf32>
    %430 = arith.addf %428, %429 : vector<16x32xf32>
    %431 = vector.extract_strided_slice %430 {offsets = [0, 0], sizes = [1, 32], strides = [1, 1]} : vector<16x32xf32> to vector<1x32xf32>
    %432 = vector.extract_strided_slice %430 {offsets = [8, 0], sizes = [1, 32], strides = [1, 1]} : vector<16x32xf32> to vector<1x32xf32>
    %433 = tpu.concatenate %431, %432 in 0 : vector<1x32xf32>, vector<1x32xf32> -> vector<2x32xf32>
    %434 = arith.truncf %433 : vector<2x32xf32> to vector<2x32xbf16>
    %c0_169 = arith.constant 0 : index
    %c0_170 = arith.constant 0 : index
    %435 = vector.load %arg9[%c0_169, %c0_170] : memref<32x32xbf16, #tpu.memory_space<vmem>>, vector<32x32xbf16>
    %cst_171 = arith.constant dense<0.000000e+00> : vector<2x32xf32>
    %436 = tpu.matmul %434, %435, %cst_171 {dimension_numbers = #tpu.dot_dimension_numbers<[1], [0], [0], [1], [0, 0, 1, 1], [], []>} : vector<2x32xbf16>, vector<32x32xbf16>, vector<2x32xf32> -> vector<2x32xf32>
    %c2 = arith.constant 2 : index
    %c0_172 = arith.constant 0 : index
    %437 = vector.load %arg6[%c2, %c0_172] : memref<15x32xf32, #tpu.memory_space<vmem>>, vector<1x32xf32>
    %438 = vector.broadcast %437 : vector<1x32xf32> to vector<2x32xf32>
    %439 = arith.addf %436, %438 : vector<2x32xf32>
    %440 = math.tanh %439 : vector<2x32xf32>
    %c0_173 = arith.constant 0 : index
    %c0_174 = arith.constant 0 : index
    %441 = vector.load %arg10[%c0_173, %c0_174] : memref<2x32xf32, #tpu.memory_space<vmem>>, vector<2x32xf32>
    tpu.vector_store %arg10[%c0_173, %c0_174], %440 {strides = array<i32>} : memref<2x32xf32, #tpu.memory_space<vmem>>, vector<2x32xf32>,
    return
  }
}

</mosaic_0001>

<bundles_post_ra>
// kernel: tpu_custom_call.1
= control target key start
LH: loop header
LB: loop body
LE: loop exit
PB: predicated region body
PF: predicated region fallthrough
CT: control target
= control target key end

     0   :  { %vm41_vm0 = vcmask 261120   ;;  %s2167_s0 = inlined_call_operand.vmem [shape: f32[16,32], index: 0, kind: input, shape index: {}]   ;;  %s2168_s1 = inlined_call_operand.vmem [shape: f32[2,8], index: 1, kind: input, shape index: {}]   ;;  %s2169_s2 = inlined_call_operand.vmem [shape: bf16[2,32,96], index: 2, kind: input, shape index: {}]   ;;  %s2170_s3 = inlined_call_operand.vmem [shape: bf16[2,32,32], index: 3, kind: input, shape index: {}]   ;;  %s2171_s4 = inlined_call_operand.vmem [shape: bf16[2,32,128], index: 4, kind: input, shape index: {}]   ;;  %s2172_s5 = inlined_call_operand.vmem [shape: bf16[2,128,32], index: 5, kind: input, shape index: {}]   ;;  %s2173_s6 = inlined_call_operand.vmem [shape: f32[15,32], index: 6, kind: input, shape index: {}]   ;;  %s2174_s7 = inlined_call_operand.vmem [shape: f32[2,96], index: 7, kind: input, shape index: {}]   ;;  %s2175_s8 = inlined_call_operand.vmem [shape: f32[2,128], index: 8, kind: input, shape index: {}]   ;;  %s2176_s9 = inlined_call_operand.vmem [shape: bf16[32,32], index: 9, kind: input, shape index: {}]   ;;  %s2177_s10 = inlined_call_operand.hbm [shape: f32[2,32], index: 10, kind: output, shape index: {}]  }
   0x1   :  { %v37_v0 = vld [vmem:[%s2167_s0] sm:$0xff]  ;;  %v38_v1 = vld [vmem:[%s2167_s0 + $0x8] sm:$0xff] }
   0x2   :  { %v42_v2 = vsel %vm41_vm0, %v37_v0, 0.0  ;;  %v48_v3 = vmul.f32 %v37_v0, %v37_v0  ;;  %v45_v5 = vsel %vm41_vm0, %v38_v1, 0.0  ;;  %v49_v6 = vmul.f32 %v38_v1, %v38_v1 }
   0x3   :  { %43 = vadd.xlane.f32.xlu0 %v42_v2 }
   0x4   :  { %v50_v4 = vsel %vm41_vm0, %v48_v3, 0.0  ;;  %v53_v7 = vsel %vm41_vm0, %v49_v6, 0.0 }
   0x5   :  { %51 = vadd.xlane.f32.xlu1 %v50_v4 }
   0x6   :  { %15 = vsyncpa [#allocation4], 0  ;;  %v1597_v11 = vld [vmem:[%s2169_s2 + $0x8] sm:$0xff]  ;;  %v1596_v14 = vld [vmem:[%s2169_s2] sm:$0xff]  ;;  %s1752_s26 = smov 80   ;;  %s1753_s27 = smov 112  }
   0x7   :  { %130 = vmatpush.bf16.msra.mxu0 %v1597_v11  ;;  %v1633_v38 = vld [vmem:[%s2173_s6] ss:$0 sm:$0xff]  ;;  %v1634_v44 = vld [vmem:[%s2173_s6 + $0x1] ss:$0 sm:$0xff]  ;;  %s1754_s28 = smov 96   ;;  %vm147_vm7 = vcmask 130048  }
   0x8   :  { %v1635_v49 = vld [vmem:[%s2174_s7] ss:$0 sm:$0xff]  ;;  %vm167_vm8 = vcmask 64512   ;;  %s1755_s13 = smov 48   ;;  %s1756_s14 = smov 64   ;;  %vm185_vm9 = vcmask 1043456  }
   0x9   :  { %v1636_v6 = vld [vmem:[%s2168_s1] ss:$0 sm:$0xff]  ;;  %s1757_s15 = smov 16   ;;  %vm263_vm10 = vcmask 261248   ;;  %s1758_s22 = smov [#allocation3]  }
   0xa   :  { %s1416_s25 = sshll.u32 %s2177_s10, 4  ;;  %s1417_s25 = int_to_ptr.hbm [resolvable:$true] %s1416_s25 }
   0xb   :  { %46 = vadd.xlane.f32.xlu0 %v45_v5  ;;  %131 = vmatpush.bf16.msra.mxu0 %v1596_v14  ;;  %v1637_v14 = vld [vmem:[%s2168_s1 + $0x1] ss:$0 sm:$0xff] }
   0xd   :  { %54 = vadd.xlane.f32.xlu1 %v53_v7 }
  0x76   :  { %v44_v8 = vpop.xlane.xlu0 %43 }
  0x77   :  { %v56_v9 = vmul.f32 0.03125, %v44_v8 }
  0x78   :  { %v52_v10 = vpop.xlane.xlu1 %51 }
  0x79   :  { %v60_v12 = vmul.f32 %v56_v9, %v56_v9  ;;  %v58_v13 = vmul.f32 0.03125, %v52_v10  ;;  %v64_v35 = vsub.f32 %v37_v0, %v56_v9 }
  0x7b   :  { %v62_v15 = vsub.f32 %v58_v13, %v60_v12 }
  0x7d   :  { %v66_v16 = vadd.f32 1e-12, %v62_v15 }
  0x7e   :  { %v47_v17 = vpop.xlane.xlu0 %46 }
  0x7f   :  { %1656 = vrsqrt.f32 %v66_v16  ;;  %v57_v18 = vmul.f32 0.03125, %v47_v17  ;;  %vm74_vm2 = vweird.f32 %v66_v16 }
  0x80   :  { %v55_v19 = vpop.xlane.xlu1 %54 }
  0x81   :  { %v61_v20 = vmul.f32 %v57_v18, %v57_v18  ;;  %v59_v21 = vmul.f32 0.03125, %v55_v19  ;;  %v65_v40 = vsub.f32 %v38_v1, %v57_v18 }
  0x83   :  { %v63_v22 = vsub.f32 %v59_v21, %v61_v20 }
  0x85   :  { %v1657_v23 = vpop.eup %1656  ;;  %v67_v24 = vadd.f32 1e-12, %v63_v22 }
  0x86   :  { %v69_v25 = vmul.f32 %v1657_v23, %v66_v16  ;;  %vm75_vm1 = vweird.f32 %v1657_v23 }
  0x87   :  { %1658 = vrsqrt.f32 %v67_v24  ;;  %vm76_vm3 = vmor %vm74_vm2, %vm75_vm1  ;;  %vm84_vm5 = vweird.f32 %v67_v24 }
  0x88   :  { %v70_v26 = vmul.f32 %v1657_v23, %v69_v25 }
  0x8a   :  { %v71_v27 = vmul.f32 0.5, %v70_v26 }
  0x8c   :  { %v72_v28 = vsub.f32 1.5, %v71_v27 }
  0x8d   :  { %v1659_v29 = vpop.eup %1658 }
  0x8e   :  { %v73_v30 = vmul.f32 %v1657_v23, %v72_v28  ;;  %v79_v31 = vmul.f32 %v1659_v29, %v67_v24  ;;  %vm85_vm4 = vweird.f32 %v1659_v29 }
  0x8f   :  { %vm86_vm6 = vmor %vm84_vm5, %vm85_vm4 }
  0x90   :  { %v80_v32 = vmul.f32 %v1659_v29, %v79_v31  ;;  %v77_v33 = vsel %vm76_vm3, %v1657_v23, %v73_v30 }
  0x91   :  { %v88_v37 = vmul.f32 %v77_v33, %v64_v35 }
  0x92   :  { %v81_v34 = vmul.f32 0.5, %v80_v32 }
  0x93   :  { %v91_v43 = vmul.f32 %v1633_v38, %v88_v37 }
  0x94   :  { %v82_v36 = vsub.f32 1.5, %v81_v34 }
  0x95   :  { %v1836_v46 = vadd.f32 %v1634_v44, %v91_v43 }
  0x96   :  { %v83_v39 = vmul.f32 %v1659_v29, %v82_v36 }
  0x98   :  { %v87_v41 = vsel %vm86_vm6, %v1659_v29, %v83_v39 }
  0x99   :  { %v89_v42 = vmul.f32 %v87_v41, %v65_v40 }
  0x9b   :  { %v92_v45 = vmul.f32 %v1633_v38, %v89_v42 }
  0x9d   :  { %v1838_v47 = vadd.f32 %v1634_v44, %v92_v45 }
  0x9f   :  { %v102_v48 = vpack.c.bf16 %v1838_v47, %v1836_v46 }
  0xa1   :  { %1433 = vmatmul.msk.bf16.vlgmr.msra.gmra.mxu0 %vm41_vm0, %v102_v48 }
 0x11e   :  { %v133_v50 = vpop.f32.mrf.mxu0 }
 0x11f   :  { %v134_v51 = vadd.f32 %v1635_v49, %v133_v50 }
 0x121   :  { %v138_v52 = vpack.c.bf16 %v134_v51, %v134_v51 }
 0x123   :  { %v143_v53 = vunpack.c.l.b16 %v138_v52 }
 0x125   :  { %v144_v54 = vpack.c.b16 %v143_v53, %v143_v53 }
 0x126   :  { %v135_v55 = vpop.f32.mrf.mxu0 }
 0x127   :  { %v136_v56 = vadd.f32 %v1635_v49, %v135_v55  ;;  %205 = vrot.lane.b32.xlu2 %v144_v54, %s1752_s26 }
 0x129   :  { %v139_v57 = vpack.c.bf16 %v136_v56, %v136_v56 }
 0x12b   :  { %v268_v58 = vunpack.c.l.b16 %v139_v57 }
 0x12d   :  { %v1847_v59 = vpack.c.b16 %v268_v58, %v268_v58 }
 0x12f   :  { %325 = vrot.lane.b32.xlu1 %v1847_v59, %s1753_s27  ;;  %327 = vrot.lane.b32.xlu0 %v1847_v59, %s1752_s26 }
 0x130   :  { %203 = vrot.lane.b32.xlu2 %v144_v54, %s1753_s27 }
 0x138   :  { %145 = vrot.lane.b32.xlu2 %v144_v54, %s1754_s28 }
 0x140   :  { %270 = vrot.lane.b32.xlu2 %v1847_v59, %s1754_s28 }
 0x181   :  { %v206_v60 = vpop.permute.xlu2 %205 }
 0x182   :  { %v211_v61 = vsel %vm147_vm7, %v206_v60, 0 }
 0x183   :  { %220 = vmatpush.bf16.xpose.msra.mxu3 %v211_v61 }
 0x18a   :  { %v204_v62 = vpop.permute.xlu2 %203 }
 0x18b   :  { %1436 = vmatmul.msk.bf16.vlgmr.msra.gmra.mxu3 %vm147_vm7, %v204_v62 }
 0x192   :  { %v146_v63 = vpop.permute.xlu2 %145 }
 0x193   :  { %v152_v0 = vsel %vm147_vm7, %v146_v63, 0 }
 0x194   :  { %161 = vmatpush.bf16.xpose.msra.mxu1 %v152_v0 }
 0x19a   :  { %v271_v1 = vpop.permute.xlu2 %270 }
 0x19b   :  { %1434 = vmatmul.msk.bf16.vlgmr.msra.gmra.mxu1 %vm147_vm7, %v138_v52  ;;  %v276_v2 = vsel %vm147_vm7, %v271_v1, 0 }
 0x19c   :  { %285 = vmatpush.bf16.xpose.msrb.mxu0 %v276_v2 }
 0x1a1   :  { %v328_v3 = vpop.permute.xlu0 %327  ;;  %v326_v5 = vpop.permute.xlu1 %325 }
 0x1a2   :  { %v333_v4 = vsel %vm147_vm7, %v328_v3, 0 }
 0x1a3   :  { %1438 = vmatmul.msk.bf16.vlgmr.msrb.gmra.mxu0 %vm147_vm7, %v139_v57  ;;  %342 = vmatpush.bf16.xpose.msrb.mxu3 %v333_v4 }
 0x1aa   :  { %1440 = vmatmul.msk.bf16.vlgmr.msrb.gmra.mxu3 %vm147_vm7, %v326_v5 }
 0x20e   :  { %v222_v7 = vpop.f32.mrf.mxu3 }
 0x20f   :  { %v223_v8 = vadd.f32 %v1636_v6, %v222_v7 }
 0x211   :  { %v226_v9 = vsel %vm167_vm8, %v223_v8, -inf }
 0x212   :  { %227 = vmax.xlane.f32.xlu2 %v226_v9 }
 0x216   :  { %v224_v10 = vpop.f32.mrf.mxu3 }
 0x218   :  { %v163_v11 = vpop.f32.mrf.mxu1 }
 0x219   :  { %v164_v12 = vadd.f32 %v1636_v6, %v163_v11 }
 0x21b   :  { %v168_v13 = vsel %vm167_vm8, %v164_v12, -inf }
 0x21c   :  { %169 = vmax.xlane.f32.xlu1 %v168_v13 }
 0x220   :  { %v165_v15 = vpop.f32.mrf.mxu1  ;;  %v287_v16 = vpop.f32.mrf.mxu0 }
 0x221   :  { %v288_v17 = vadd.f32 %v1637_v14, %v287_v16  ;;  %v1598_v15 = vld [vmem:[%s2170_s3] sm:$0xff] }
 0x223   :  { %v291_v18 = vsel %vm167_vm8, %v288_v17, -inf }
 0x224   :  { %292 = vmax.xlane.f32.xlu2 %v291_v18 }
 0x228   :  { %v289_v19 = vpop.f32.mrf.mxu0 }
 0x22d   :  { %v344_v20 = vpop.f32.mrf.mxu3 }
 0x22e   :  { %v345_v21 = vadd.f32 %v1637_v14, %v344_v20  ;;  %v1599_v14 = vld [vmem:[%s2170_s3 + $0x8] sm:$0xff] }
 0x22f   :  { %415 = vmatpush.bf16.msra.mxu0 %v1599_v14 }
 0x230   :  { %v348_v22 = vsel %vm167_vm8, %v345_v21, -inf }
 0x231   :  { %349 = vmax.xlane.f32.xlu0 %v348_v22 }
 0x233   :  { %416 = vmatpush.bf16.msra.mxu0 %v1598_v15  ;;  %v1609_v15 = vld [vmem:[%s2172_s5 + $0x38] sm:$0xff] }
 0x234   :  { %661 = vmatpush.bf16.msra.mxu3 %v1609_v15 }
 0x235   :  { %v346_v23 = vpop.f32.mrf.mxu3 }
 0x245   :  { %238 = vrot.lane.b32.xlu0 %v144_v54, %s1755_s13 }
 0x24d   :  { %180 = vrot.lane.b32.xlu0 %v144_v54, %s1756_s14 }
 0x255   :  { %303 = vrot.lane.b32.xlu0 %v1847_v59, %s1756_s14 }
 0x285   :  { %v228_v24 = vpop.xlane.xlu2 %227 }
 0x286   :  { %v229_v25 = vsub.f32 %v223_v8, %v228_v24 }
 0x288   :  { %v230_v26 = vmul.f32 1.442695, %v229_v25 }
 0x28a   :  { %1660 = vpow2.f32 %v230_v26 }
 0x28f   :  { %v170_v29 = vpop.xlane.xlu1 %169 }
 0x290   :  { %v1661_v27 = vpop.eup %1660  ;;  %v171_v32 = vsub.f32 %v164_v12, %v170_v29 }
 0x291   :  { %v232_v28 = vsel %vm167_vm8, %v1661_v27, 0.0 }
 0x292   :  { %233 = vadd.xlane.f32.xlu2 %v232_v28  ;;  %v172_v34 = vmul.f32 1.442695, %v171_v32 }
 0x297   :  { %v293_v35 = vpop.xlane.xlu2 %292 }
 0x298   :  { %v294_v37 = vsub.f32 %v288_v17, %v293_v35 }
 0x29a   :  { %v295_v39 = vmul.f32 1.442695, %v294_v37 }
 0x2a4   :  { %v350_v30 = vpop.xlane.xlu0 %349 }
 0x2a5   :  { %v351_v31 = vsub.f32 %v345_v21, %v350_v30  ;;  %v1638_v21 = vld [vmem:[%s2173_s6 + $0x3] ss:$0 sm:$0xff] }
 0x2a7   :  { %v352_v33 = vmul.f32 1.442695, %v351_v31 }
 0x2a9   :  { %1662 = vpow2.f32 %v352_v33 }
 0x2aa   :  { %360 = vrot.lane.b32.xlu2 %v1847_v59, %s1755_s13  ;;  %1664 = vpow2.f32 %v172_v34 }
 0x2ab   :  { %1666 = vpow2.f32 %v295_v39 }
 0x2af   :  { %v1663_v36 = vpop.eup %1662 }
 0x2b0   :  { %v354_v38 = vsel %vm167_vm8, %v1663_v36, 0.0  ;;  %v1665_v40 = vpop.eup %1664 }
 0x2b1   :  { %355 = vadd.xlane.f32.xlu1 %v354_v38  ;;  %v174_v43 = vsel %vm167_vm8, %v1665_v40, 0.0  ;;  %v1667_v44 = vpop.eup %1666  ;;  %v1601_v38 = vld [vmem:[%s2171_s4 + $0x8] sm:$0xff] }
 0x2b2   :  { %v297_v49 = vsel %vm167_vm8, %v1667_v44, 0.0 }
 0x2b7   :  { %v239_v41 = vpop.permute.xlu0 %238 }
 0x2b8   :  { %v244_v42 = vsel %vm185_vm9, %v239_v41, 0 }
 0x2b9   :  { %253 = vmatpush.bf16.msra.mxu2 %v244_v42  ;;  %175 = vadd.xlane.f32.xlu1 %v174_v43 }
 0x2bf   :  { %v181_v45 = vpop.permute.xlu0 %180 }
 0x2c0   :  { %v187_v48 = vsel %vm185_vm9, %v181_v45, 0 }
 0x2c1   :  { %196 = vmatpush.bf16.msrb.mxu1 %v187_v48  ;;  %298 = vadd.xlane.f32.xlu1 %v297_v49 }
 0x2c7   :  { %v304_v50 = vpop.permute.xlu0 %303 }
 0x2c8   :  { %v309_v51 = vsel %vm185_vm9, %v304_v50, 0 }
 0x2c9   :  { %318 = vmatpush.bf16.msra.mxu1 %v309_v51 }
 0x305   :  { %v234_v52 = vpop.xlane.xlu2 %233 }
 0x306   :  { %1668 = vrcp.f32 %v234_v52 }
 0x30c   :  { %v1669_v53 = vpop.eup %1668 }
 0x30d   :  { %v361_v54 = vpop.permute.xlu2 %360  ;;  %v236_v55 = vmul.f32 %v1669_v53, %v1661_v27 }
 0x30e   :  { %v366_v56 = vsel %vm185_vm9, %v361_v54, 0 }
 0x30f   :  { %375 = vmatpush.bf16.msrb.mxu2 %v366_v56  ;;  %v237_v57 = vpack.c.bf16 %v236_v55, %v236_v55 }
 0x311   :  { %1437 = vmatmul.msk.bf16.vlgmr.msra.gmra.mxu2 %vm167_vm8, %v237_v57 }
 0x324   :  { %v356_v58 = vpop.xlane.xlu1 %355 }
 0x325   :  { %1670 = vrcp.f32 %v356_v58 }
 0x32b   :  { %v1671_v59 = vpop.eup %1670 }
 0x32c   :  { %v358_v60 = vmul.f32 %v1671_v59, %v1663_v36  ;;  %v176_v61 = vpop.xlane.xlu1 %175 }
 0x32d   :  { %1672 = vrcp.f32 %v176_v61 }
 0x32e   :  { %v359_v62 = vpack.c.bf16 %v358_v60, %v358_v60 }
 0x330   :  { %1441 = vmatmul.msk.bf16.vlgmr.msrb.gmra.mxu2 %vm167_vm8, %v359_v62 }
 0x333   :  { %v1673_v63 = vpop.eup %1672 }
 0x334   :  { %v178_v0 = vmul.f32 %v1673_v63, %v1665_v40  ;;  %v299_v1 = vpop.xlane.xlu1 %298  ;;  %v1639_v63 = vld [vmem:[%s2173_s6 + $0x4] ss:$0 sm:$0xff] }
 0x335   :  { %1674 = vrcp.f32 %v299_v1 }
 0x336   :  { %v179_v2 = vpack.c.bf16 %v178_v0, %v178_v0 }
 0x338   :  { %1435 = vmatmul.msk.bf16.vlgmr.msrb.gmra.mxu1 %vm167_vm8, %v179_v2 }
 0x339   :  { %507 = vmatpush.bf16.msrb.mxu1 %v1601_v38 }
 0x33b   :  { %v1675_v3 = vpop.eup %1674 }
 0x33c   :  { %v301_v4 = vmul.f32 %v1675_v3, %v1667_v44 }
 0x33e   :  { %v302_v5 = vpack.c.bf16 %v301_v4, %v301_v4 }
 0x348   :  { %1439 = vmatmul.msk.bf16.vlgmr.msra.gmra.mxu1 %vm167_vm8, %v302_v5 }
 0x394   :  { %v255_v6 = vpop.f32.mrf.mxu2 }
 0x395   :  { %260 = vrot.lane.b32.xlu1 %v255_v6, %s1757_s15  ;;  %v1640_v6 = vld [vmem:[%s2173_s6 + $0x5] ss:$0 sm:$0xff] }
 0x39c   :  { %v257_v7 = vpop.f32.mrf.mxu2 }
 0x3b3   :  { %v377_v8 = vpop.f32.mrf.mxu2 }
 0x3b4   :  { %382 = vrot.lane.b32.xlu2 %v377_v8, %s1757_s15 }
 0x3b5   :  { %v198_v9 = vpop.f32.mrf.mxu1 }
 0x3b6   :  { %202 = vst.msk [vmem:[#allocation2] sm:$0xff] %vm147_vm7, %v198_v9 }
 0x3bb   :  { %v379_v10 = vpop.f32.mrf.mxu2 }
 0x3bd   :  { %v200_v11 = vpop.f32.mrf.mxu1 }
 0x3be   :  { %v1641_v11 = vld [vmem:[%s2175_s8] ss:$0 sm:$0xff] }
 0x3c5   :  { %v320_v12 = vpop.f32.mrf.mxu1 }
 0x3c6   :  { %324 = vst.msk [vmem:[#allocation2 + $0x8] sm:$0xff] %vm147_vm7, %v320_v12 }
 0x3cd   :  { %v322_v13 = vpop.f32.mrf.mxu1 }
 0x407   :  { %v261_v16 = vpop.permute.xlu1 %260 }
 0x408   :  { %264 = vst.msk [vmem:[#allocation2] sm:$0xff] %vm263_vm10, %v261_v16 }
 0x40e   :  { %v383_v17 = vpop.permute.xlu2 %382 }
 0x40f   :  { %385 = vst.msk [vmem:[#allocation2 + $0x8] sm:$0xff] %vm263_vm10, %v383_v17  ;;  %v386_v18 = vld [vmem:[#allocation2] sm:$0xff] }
 0x416   :  { %v387_v19 = vld [vmem:[#allocation2 + $0x8] sm:$0xff] }
 0x417   :  { %v388_v20 = vpack.c.bf16 %v387_v19, %v386_v18  ;;  %v1608_v19 = vld [vmem:[%s2172_s5 + $0x30] sm:$0xff] }
 0x418   :  { %662 = vmatpush.bf16.msra.mxu3 %v1608_v19 }
 0x419   :  { %1450 = vmatmul.msk.bf16.vlgmr.msra.gmra.mxu0 %vm41_vm0, %v388_v20 }
 0x496   :  { %v418_v22 = vpop.f32.mrf.mxu0 }
 0x497   :  { %v419_v23 = vadd.f32 %v1638_v21, %v418_v22 }
 0x499   :  { %v423_v24 = vadd.f32 %v419_v23, %v1836_v46  ;;  %v1607_v23 = vld [vmem:[%s2172_s5 + $0x28] sm:$0xff] }
 0x49a   :  { %663 = vmatpush.bf16.msra.mxu3 %v1607_v23 }
 0x49b   :  { %v425_v25 = vsel %vm41_vm0, %v423_v24, 0.0  ;;  %v431_v26 = vmul.f32 %v423_v24, %v423_v24 }
 0x49c   :  { %426 = vadd.xlane.f32.xlu0 %v425_v25 }
 0x49d   :  { %v433_v27 = vsel %vm41_vm0, %v431_v26, 0.0  ;;  %v1606_v26 = vld [vmem:[%s2172_s5 + $0x20] sm:$0xff] }
 0x49e   :  { %v420_v28 = vpop.f32.mrf.mxu0  ;;  %434 = vadd.xlane.f32.xlu1 %v433_v27  ;;  %664 = vmatpush.bf16.msra.mxu3 %v1606_v26 }
 0x49f   :  { %v421_v29 = vadd.f32 %v1638_v21, %v420_v28 }
 0x4a1   :  { %v424_v30 = vadd.f32 %v421_v29, %v1838_v47  ;;  %v1600_v47 = vld [vmem:[%s2171_s4] sm:$0xff] }
 0x4a2   :  { %508 = vmatpush.bf16.msrb.mxu1 %v1600_v47 }
 0x4a3   :  { %v428_v31 = vsel %vm41_vm0, %v424_v30, 0.0  ;;  %v432_v32 = vmul.f32 %v424_v30, %v424_v30 }
 0x4a4   :  { %429 = vadd.xlane.f32.xlu2 %v428_v31  ;;  %v1605_v31 = vld [vmem:[%s2172_s5 + $0x18] sm:$0xff] }
 0x4a5   :  { %v436_v33 = vsel %vm41_vm0, %v432_v32, 0.0  ;;  %665 = vmatpush.bf16.msra.mxu3 %v1605_v31 }
 0x4a6   :  { %437 = vadd.xlane.f32.xlu0 %v436_v33 }
 0x50f   :  { %v427_v34 = vpop.xlane.xlu0 %426 }
 0x510   :  { %v439_v46 = vmul.f32 0.03125, %v427_v34 }
 0x511   :  { %v435_v35 = vpop.xlane.xlu1 %434 }
 0x512   :  { %v443_v36 = vmul.f32 %v439_v46, %v439_v46  ;;  %v441_v37 = vmul.f32 0.03125, %v435_v35  ;;  %v447_v61 = vsub.f32 %v423_v24, %v439_v46  ;;  %v1604_v35 = vld [vmem:[%s2172_s5 + $0x10] sm:$0xff] }
 0x513   :  { %666 = vmatpush.bf16.msra.mxu3 %v1604_v35 }
 0x514   :  { %v445_v39 = vsub.f32 %v441_v37, %v443_v36 }
 0x516   :  { %v449_v40 = vadd.f32 1e-12, %v445_v39 }
 0x517   :  { %v430_v41 = vpop.xlane.xlu2 %429 }
 0x518   :  { %1676 = vrsqrt.f32 %v449_v40  ;;  %v440_v42 = vmul.f32 0.03125, %v430_v41  ;;  %vm457_vm12 = vweird.f32 %v449_v40 }
 0x519   :  { %v438_v43 = vpop.xlane.xlu0 %437 }
 0x51a   :  { %v444_v44 = vmul.f32 %v440_v42, %v440_v42  ;;  %v442_v45 = vmul.f32 0.03125, %v438_v43  ;;  %v448_v2 = vsub.f32 %v424_v30, %v440_v42  ;;  %v1603_v42 = vld [vmem:[%s2172_s5 + $0x8] sm:$0xff] }
 0x51b   :  { %667 = vmatpush.bf16.msra.mxu3 %v1603_v42 }
 0x51c   :  { %v446_v48 = vsub.f32 %v442_v45, %v444_v44 }
 0x51e   :  { %v1677_v49 = vpop.eup %1676  ;;  %v450_v50 = vadd.f32 1e-12, %v446_v48 }
 0x51f   :  { %v452_v51 = vmul.f32 %v1677_v49, %v449_v40  ;;  %vm458_vm11 = vweird.f32 %v1677_v49 }
 0x520   :  { %1678 = vrsqrt.f32 %v450_v50  ;;  %vm459_vm13 = vmor %vm457_vm12, %vm458_vm11  ;;  %vm467_vm15 = vweird.f32 %v450_v50 }
 0x521   :  { %v453_v52 = vmul.f32 %v1677_v49, %v452_v51 }
 0x523   :  { %v454_v53 = vmul.f32 0.5, %v453_v52  ;;  %v1602_v52 = vld [vmem:[%s2172_s5] sm:$0xff] }
 0x524   :  { %668 = vmatpush.bf16.msra.mxu3 %v1602_v52 }
 0x525   :  { %v455_v54 = vsub.f32 1.5, %v454_v53 }
 0x526   :  { %v1679_v55 = vpop.eup %1678 }
 0x527   :  { %v456_v56 = vmul.f32 %v1677_v49, %v455_v54  ;;  %v462_v57 = vmul.f32 %v1679_v55, %v450_v50  ;;  %vm468_vm14 = vweird.f32 %v1679_v55 }
 0x528   :  { %vm469_vm1 = vmor %vm467_vm15, %vm468_vm14 }
 0x529   :  { %v463_v58 = vmul.f32 %v1679_v55, %v462_v57  ;;  %v460_v59 = vsel %vm459_vm13, %v1677_v49, %v456_v56 }
 0x52a   :  { %v471_v0 = vmul.f32 %v460_v59, %v447_v61 }
 0x52b   :  { %v464_v60 = vmul.f32 0.5, %v463_v58 }
 0x52c   :  { %v474_v4 = vmul.f32 %v1639_v63, %v471_v0 }
 0x52d   :  { %v465_v62 = vsub.f32 1.5, %v464_v60 }
 0x52e   :  { %v1927_v8 = vadd.f32 %v1640_v6, %v474_v4 }
 0x52f   :  { %v466_v1 = vmul.f32 %v1679_v55, %v465_v62 }
 0x531   :  { %v470_v3 = vsel %vm469_vm1, %v1679_v55, %v466_v1 }
 0x532   :  { %v472_v5 = vmul.f32 %v470_v3, %v448_v2 }
 0x534   :  { %v475_v7 = vmul.f32 %v1639_v63, %v472_v5 }
 0x536   :  { %v1929_v9 = vadd.f32 %v1640_v6, %v475_v7 }
 0x538   :  { %v479_v10 = vpack.c.bf16 %v1929_v9, %v1927_v8 }
 0x53a   :  { %1459 = vmatmul.msk.bf16.vlgmr.msrb.gmra.mxu1 %vm41_vm0, %v479_v10 }
 0x5b7   :  { %v510_v12 = vpop.f32.mrf.mxu1 }
 0x5b8   :  { %v1937_v13 = vadd.f32 %v1641_v11, %v510_v12 }
 0x5ba   :  { %v1940_v14 = vmul.f32 0.70710677, %v1937_v13 }
 0x5bc   :  { %v519_v16 = vand.u32 2147483647, %v1940_v14  ;;  %vm585_vm14 = vcmp.ge.f32.partialorder %v1940_v14, 0.0  ;;  %v1642_v14 = vld [vmem:[%s2173_s6 + $0x6] ss:$0 sm:$0xff] }
 0x5be   :  { %v521_v17 = vmul.f32 0.3275911, %v519_v16  ;;  %v573_v47 = vsub.f32 0.0, %v519_v16 }
 0x5bf   :  { %v512_v18 = vpop.f32.mrf.mxu1 }
 0x5c0   :  { %v523_v20 = vadd.f32 1.0, %v521_v17  ;;  %v1949_v21 = vadd.f32 %v1641_v11, %v512_v18  ;;  %v575_v48 = vmul.f32 %v573_v47, %v519_v16 }
 0x5c2   :  { %1680 = vrcp.f32 %v523_v20  ;;  %v1952_v22 = vmul.f32 0.70710677, %v1949_v21  ;;  %v536_v32 = vand.u32 2147483648, %v523_v20  ;;  %v534_v34 = vand.u32 2147483647, %v523_v20 }
 0x5c3   :  { %vm530_vm3 = vweird.f32 %v523_v20  ;;  %v577_v56 = vmul.f32 1.442695, %v575_v48 }
 0x5c4   :  { %v520_v24 = vand.u32 2147483647, %v1952_v22  ;;  %v537_v36 = vor.u32 1.1754944e-38, %v536_v32  ;;  %vm535_vm5 = vcmp.eq.f32.partialorder %v534_v34, 8.507059e+37  ;;  %vm586_vm15 = vcmp.ge.f32.partialorder %v1952_v22, 0.0 }
 0x5c6   :  { %v522_v25 = vmul.f32 0.3275911, %v520_v24  ;;  %v574_v60 = vsub.f32 0.0, %v520_v24 }
 0x5c8   :  { %v1681_v27 = vpop.eup %1680  ;;  %v524_v29 = vadd.f32 1.0, %v522_v25  ;;  %v576_v1 = vmul.f32 %v574_v60, %v520_v24 }
 0x5c9   :  { %v526_v28 = vmul.f32 %v1681_v27, %v523_v20  ;;  %vm531_vm2 = vweird.f32 %v1681_v27 }
 0x5ca   :  { %1682 = vrcp.f32 %v524_v29  ;;  %vm532_vm4 = vmor %vm530_vm3, %vm531_vm2  ;;  %v551_v45 = vand.u32 2147483648, %v524_v29  ;;  %v549_v50 = vand.u32 2147483647, %v524_v29  ;;  %vm545_vm11 = vweird.f32 %v524_v29 }
 0x5cb   :  { %v527_v30 = vsub.f32 1.0, %v526_v28  ;;  %1684 = vpow2.f32 %v577_v56  ;;  %v579_v6 = vmul.f32 1.442695, %v576_v1 }
 0x5cc   :  { %v552_v55 = vor.u32 1.1754944e-38, %v551_v45  ;;  %vm550_vm13 = vcmp.eq.f32.partialorder %v549_v50, 8.507059e+37  ;;  %v1610_v50 = vld [vmem:[%s2169_s2 + $0x10] sm:$0xff] }
 0x5cd   :  { %v528_v33 = vmul.f32 %v1681_v27, %v527_v30  ;;  %1686 = vpow2.f32 %v579_v6  ;;  %v516_v30 = vmul.f32 0.5, %v1949_v21 }
 0x5cf   :  { %v529_v46 = vadd.f32 %v1681_v27, %v528_v33 }
 0x5d0   :  { %v1683_v37 = vpop.eup %1682 }
 0x5d1   :  { %v533_v38 = vsel %vm532_vm4, %v1681_v27, %v529_v46  ;;  %v541_v40 = vmul.f32 %v1683_v37, %v524_v29  ;;  %vm546_vm6 = vweird.f32 %v1683_v37  ;;  %v1685_v7 = vpop.eup %1684  ;;  %v515_v29 = vmul.f32 0.5, %v1937_v13 }
 0x5d2   :  { %v538_v39 = vsel %vm535_vm5, %v537_v36, %v533_v38  ;;  %vm547_vm12 = vmor %vm545_vm11, %vm546_vm6 }
 0x5d3   :  { %v555_v41 = vmul.f32 1.0614054, %v538_v39  ;;  %v542_v43 = vsub.f32 1.0, %v541_v40  ;;  %v1687_v20 = vpop.eup %1686 }
 0x5d5   :  { %v557_v44 = vadd.f32 -1.4531521, %v555_v41  ;;  %v543_v49 = vmul.f32 %v1683_v37, %v542_v43 }
 0x5d7   :  { %v559_v51 = vmul.f32 %v557_v44, %v538_v39  ;;  %v544_v53 = vadd.f32 %v1683_v37, %v543_v49 }
 0x5d9   :  { %v561_v54 = vadd.f32 1.4214138, %v559_v51  ;;  %v548_v57 = vsel %vm547_vm12, %v1683_v37, %v544_v53 }
 0x5da   :  { %v553_v59 = vsel %vm550_vm13, %v552_v55, %v548_v57 }
 0x5db   :  { %v563_v58 = vmul.f32 %v561_v54, %v538_v39  ;;  %v556_v61 = vmul.f32 1.0614054, %v553_v59 }
 0x5dd   :  { %v565_v62 = vadd.f32 -0.28449672, %v563_v58  ;;  %v558_v63 = vadd.f32 -1.4531521, %v556_v61 }
 0x5df   :  { %v567_v0 = vmul.f32 %v565_v62, %v538_v39  ;;  %v560_v2 = vmul.f32 %v558_v63, %v553_v59 }
 0x5e1   :  { %v569_v3 = vadd.f32 0.2548296, %v567_v0  ;;  %v562_v4 = vadd.f32 1.4214138, %v560_v2 }
 0x5e3   :  { %v571_v5 = vmul.f32 %v569_v3, %v538_v39  ;;  %v564_v10 = vmul.f32 %v562_v4, %v553_v59 }
 0x5e5   :  { %v581_v11 = vmul.f32 %v1685_v7, %v571_v5  ;;  %v566_v12 = vadd.f32 -0.28449672, %v564_v10  ;;  %v1643_v7 = vld [vmem:[%s2173_s6 + $0x7] ss:$0 sm:$0xff] }
 0x5e7   :  { %v583_v15 = vsub.f32 1.0, %v581_v11  ;;  %v568_v16 = vmul.f32 %v566_v12, %v553_v59 }
 0x5e9   :  { %v570_v17 = vadd.f32 0.2548296, %v568_v16  ;;  %v587_v18 = vsub.f32 0.0, %v583_v15 }
 0x5eb   :  { %v572_v19 = vmul.f32 %v570_v17, %v553_v59  ;;  %v589_v24 = vsel %vm585_vm14, %v583_v15, %v587_v18  ;;  %v1644_v18 = vld [vmem:[%s2173_s6 + $0x8] ss:$0 sm:$0xff] }
 0x5ec   :  { %v591_v27 = vadd.f32 1.0, %v589_v24 }
 0x5ed   :  { %v582_v23 = vmul.f32 %v1687_v20, %v572_v19 }
 0x5ee   :  { %v593_v32 = vmul.f32 %v591_v27, %v515_v29 }
 0x5ef   :  { %v584_v25 = vsub.f32 1.0, %v582_v23 }
 0x5f1   :  { %v588_v26 = vsub.f32 0.0, %v584_v25 }
 0x5f3   :  { %v590_v28 = vsel %vm586_vm15, %v584_v25, %v588_v26  ;;  %v1645_v25 = vld [vmem:[%s2174_s7 + $0x1] ss:$0 sm:$0xff] }
 0x5f4   :  { %v592_v31 = vadd.f32 1.0, %v590_v28 }
 0x5f6   :  { %v594_v33 = vmul.f32 %v592_v31, %v516_v30 }
 0x5f8   :  { %v595_v34 = vpack.c.bf16 %v594_v33, %v593_v32 }
 0x5fa   :  { %669 = vmatmul.bf16.vlgmr.msra.gmra.mxu3 %v595_v34 }
 0x67d   :  { %v670_v46 = vpop.f32.mrf.mxu3 }
 0x67e   :  { %v671_v35 = vadd.f32 %v1642_v14, %v670_v46 }
 0x680   :  { %v675_v36 = vadd.f32 %v671_v35, %v1927_v8 }
 0x682   :  { %v677_v22 = vsel %vm41_vm0, %v675_v36, 0.0  ;;  %v683_v38 = vmul.f32 %v675_v36, %v675_v36 }
 0x683   :  { %678 = vadd.xlane.f32.xlu2 %v677_v22 }
 0x684   :  { %v685_v47 = vsel %vm41_vm0, %v683_v38, 0.0 }
 0x685   :  { %v672_v37 = vpop.f32.mrf.mxu3 }
 0x686   :  { %v673_v13 = vadd.f32 %v1642_v14, %v672_v37 }
 0x688   :  { %v676_v21 = vadd.f32 %v673_v13, %v1929_v9  ;;  %v1611_v9 = vld [vmem:[%s2169_s2 + $0x18] sm:$0xff]  ;;  %s1414_s2 = sshll.u32 %s1758_s22, 4  ;;  %s1415_s2 = int_to_ptr.vmem [resolvable:$true] %s1414_s2 }
 0x689   :  { %766 = vmatpush.bf16.msra.mxu2 %v1611_v9 }
 0x68a   :  { %v680_v39 = vsel %vm41_vm0, %v676_v21, 0.0  ;;  %v684_v40 = vmul.f32 %v676_v21, %v676_v21 }
 0x68b   :  { %681 = vadd.xlane.f32.xlu0 %v680_v39  ;;  %686 = vadd.xlane.f32.xlu2 %v685_v47  ;;  %v1646_v47 = vld [vmem:[%s2168_s1] ss:$0 sm:$0xff] }
 0x68c   :  { %v688_v41 = vsel %vm41_vm0, %v684_v40, 0.0 }
 0x68d   :  { %767 = vmatpush.bf16.msra.mxu2 %v1610_v50 }
 0x693   :  { %689 = vadd.xlane.f32.xlu0 %v688_v41 }
 0x6f6   :  { %v679_v42 = vpop.xlane.xlu2 %678 }
 0x6f7   :  { %v691_v8 = vmul.f32 0.03125, %v679_v42 }
 0x6f9   :  { %v695_v45 = vmul.f32 %v691_v8, %v691_v8  ;;  %v699_v5 = vsub.f32 %v675_v36, %v691_v8 }
 0x6fe   :  { %v682_v43 = vpop.xlane.xlu0 %681  ;;  %v687_v44 = vpop.xlane.xlu2 %686 }
 0x6ff   :  { %v693_v48 = vmul.f32 0.03125, %v687_v44  ;;  %v692_v51 = vmul.f32 0.03125, %v682_v43 }
 0x701   :  { %v697_v49 = vsub.f32 %v693_v48, %v695_v45  ;;  %v696_v54 = vmul.f32 %v692_v51, %v692_v51  ;;  %v700_v12 = vsub.f32 %v676_v21, %v692_v51 }
 0x703   :  { %v701_v52 = vadd.f32 1e-12, %v697_v49 }
 0x705   :  { %1688 = vrsqrt.f32 %v701_v52  ;;  %vm709_vm2 = vweird.f32 %v701_v52 }
 0x706   :  { %v690_v53 = vpop.xlane.xlu0 %689 }
 0x707   :  { %v694_v55 = vmul.f32 0.03125, %v690_v53 }
 0x709   :  { %v698_v56 = vsub.f32 %v694_v55, %v696_v54 }
 0x70b   :  { %v1689_v57 = vpop.eup %1688  ;;  %v702_v58 = vadd.f32 1e-12, %v698_v56 }
 0x70c   :  { %v704_v59 = vmul.f32 %v1689_v57, %v701_v52  ;;  %vm710_vm1 = vweird.f32 %v1689_v57 }
 0x70d   :  { %1690 = vrsqrt.f32 %v702_v58  ;;  %vm711_vm3 = vmor %vm709_vm2, %vm710_vm1  ;;  %vm719_vm5 = vweird.f32 %v702_v58 }
 0x70e   :  { %v705_v60 = vmul.f32 %v1689_v57, %v704_v59 }
 0x710   :  { %v706_v61 = vmul.f32 0.5, %v705_v60  ;;  %v1647_v60 = vld [vmem:[%s2168_s1 + $0x1] ss:$0 sm:$0xff] }
 0x712   :  { %v707_v62 = vsub.f32 1.5, %v706_v61 }
 0x713   :  { %v1691_v63 = vpop.eup %1690 }
 0x714   :  { %v708_v0 = vmul.f32 %v1689_v57, %v707_v62  ;;  %v714_v1 = vmul.f32 %v1691_v63, %v702_v58  ;;  %vm720_vm4 = vweird.f32 %v1691_v63 }
 0x715   :  { %vm721_vm6 = vmor %vm719_vm5, %vm720_vm4 }
 0x716   :  { %v715_v2 = vmul.f32 %v1691_v63, %v714_v1  ;;  %v712_v3 = vsel %vm711_vm3, %v1689_v57, %v708_v0 }
 0x717   :  { %v723_v10 = vmul.f32 %v712_v3, %v699_v5 }
 0x718   :  { %v716_v4 = vmul.f32 0.5, %v715_v2 }
 0x719   :  { %v726_v16 = vmul.f32 %v1643_v7, %v723_v10 }
 0x71a   :  { %v717_v6 = vsub.f32 1.5, %v716_v4 }
 0x71b   :  { %v1998_v20 = vadd.f32 %v1644_v18, %v726_v16 }
 0x71c   :  { %v718_v11 = vmul.f32 %v1691_v63, %v717_v6 }
 0x71e   :  { %v722_v15 = vsel %vm721_vm6, %v1691_v63, %v718_v11 }
 0x71f   :  { %v724_v17 = vmul.f32 %v722_v15, %v700_v12 }
 0x721   :  { %v727_v19 = vmul.f32 %v1643_v7, %v724_v17 }
 0x723   :  { %v2000_v23 = vadd.f32 %v1644_v18, %v727_v19 }
 0x725   :  { %v737_v24 = vpack.c.bf16 %v2000_v23, %v1998_v20 }
 0x727   :  { %1504 = vmatmul.msk.bf16.vlgmr.msra.gmra.mxu2 %vm41_vm0, %v737_v24 }
 0x7aa   :  { %v769_v26 = vpop.f32.mrf.mxu2 }
 0x7ab   :  { %v770_v27 = vadd.f32 %v1645_v25, %v769_v26 }
 0x7ad   :  { %v774_v28 = vpack.c.bf16 %v770_v27, %v770_v27 }
 0x7af   :  { %v779_v29 = vunpack.c.l.b16 %v774_v28 }
 0x7b1   :  { %v780_v30 = vpack.c.b16 %v779_v29, %v779_v29 }
 0x7b2   :  { %v771_v31 = vpop.f32.mrf.mxu2 }
 0x7b3   :  { %v772_v32 = vadd.f32 %v1645_v25, %v771_v31  ;;  %838 = vrot.lane.b32.xlu0 %v780_v30, %s1752_s26  ;;  %781 = vrot.lane.b32.xlu1 %v780_v30, %s1754_s28 }
 0x7b5   :  { %v775_v33 = vpack.c.bf16 %v772_v32, %v772_v32 }
 0x7b7   :  { %v900_v34 = vunpack.c.l.b16 %v775_v33 }
 0x7b9   :  { %v2010_v14 = vpack.c.b16 %v900_v34, %v900_v34 }
 0x7bb   :  { %957 = vrot.lane.b32.xlu0 %v2010_v14, %s1753_s27  ;;  %959 = vrot.lane.b32.xlu1 %v2010_v14, %s1752_s26 }
 0x7c3   :  { %814 = vrot.lane.b32.xlu0 %v780_v30, %s1756_s14 }
 0x825   :  { %v839_v46 = vpop.permute.xlu0 %838  ;;  %v782_v35 = vpop.permute.xlu1 %781 }
 0x826   :  { %v844_v36 = vsel %vm147_vm7, %v839_v46, 0  ;;  %v787_v22 = vsel %vm147_vm7, %v782_v35, 0 }
 0x827   :  { %796 = vmatpush.bf16.xpose.msrb.mxu0 %v787_v22  ;;  %853 = vmatpush.bf16.xpose.msrb.mxu2 %v844_v36 }
 0x82d   :  { %v958_v37 = vpop.permute.xlu0 %957  ;;  %v960_v13 = vpop.permute.xlu1 %959 }
 0x82e   :  { %v965_v38 = vsel %vm147_vm7, %v960_v13, 0  ;;  %1505 = vmatmul.msk.bf16.vlgmr.msrb.gmra.mxu0 %vm147_vm7, %v774_v28 }
 0x82f   :  { %974 = vmatpush.bf16.xpose.msra.mxu2 %v965_v38 }
 0x835   :  { %v815_v21 = vpop.permute.xlu0 %814 }
 0x836   :  { %v820_v39 = vsel %vm185_vm9, %v815_v21, 0 }
 0x837   :  { %829 = vmatpush.bf16.msra.mxu1 %v820_v39 }
 0x8ab   :  { %v798_v40 = vpop.f32.mrf.mxu0 }
 0x8ac   :  { %v799_v41 = vadd.f32 %v1646_v47, %v798_v40 }
 0x8ae   :  { %v802_v42 = vsel %vm167_vm8, %v799_v41, -inf }
 0x8af   :  { %803 = vmax.xlane.f32.xlu2 %v802_v42 }
 0x8b3   :  { %v800_v8 = vpop.f32.mrf.mxu0 }
 0x8c7   :  { %836 = vrot.lane.b32.xlu2 %v780_v30, %s1753_s27 }
 0x8cf   :  { %902 = vrot.lane.b32.xlu2 %v2010_v14, %s1754_s28 }
 0x922   :  { %v804_v43 = vpop.xlane.xlu2 %803 }
 0x923   :  { %v805_v44 = vsub.f32 %v799_v41, %v804_v43 }
 0x925   :  { %v806_v45 = vmul.f32 1.442695, %v805_v44 }
 0x927   :  { %1692 = vpow2.f32 %v806_v45 }
 0x92a   :  { %v837_v48 = vpop.permute.xlu2 %836 }
 0x92b   :  { %1507 = vmatmul.msk.bf16.vlgmr.msrb.gmra.mxu2 %vm147_vm7, %v837_v48  ;;  %v1613_v48 = vld [vmem:[%s2170_s3 + $0x18] sm:$0xff] }
 0x92d   :  { %v1693_v9 = vpop.eup %1692 }
 0x92e   :  { %v808_v49 = vsel %vm167_vm8, %v1693_v9, 0.0 }
 0x92f   :  { %809 = vadd.xlane.f32.xlu1 %v808_v49 }
 0x932   :  { %v903_v50 = vpop.permute.xlu2 %902 }
 0x933   :  { %v908_v51 = vsel %vm147_vm7, %v903_v50, 0 }
 0x934   :  { %917 = vmatpush.bf16.xpose.msrb.mxu1 %v908_v51 }
 0x93b   :  { %1511 = vmatmul.msk.bf16.vlgmr.msra.gmra.mxu2 %vm147_vm7, %v958_v37 }
 0x9a2   :  { %v810_v52 = vpop.xlane.xlu1 %809 }
 0x9a3   :  { %1694 = vrcp.f32 %v810_v52 }
 0x9a9   :  { %v1695_v53 = vpop.eup %1694 }
 0x9aa   :  { %v812_v54 = vmul.f32 %v1695_v53, %v1693_v9  ;;  %v1612_v9 = vld [vmem:[%s2170_s3 + $0x10] sm:$0xff] }
 0x9ac   :  { %v813_v55 = vpack.c.bf16 %v812_v54, %v812_v54 }
 0x9ae   :  { %1506 = vmatmul.msk.bf16.vlgmr.msra.gmra.mxu1 %vm167_vm8, %v813_v55  ;;  %v855_v56 = vpop.f32.mrf.mxu2  ;;  %v1648_v55 = vld [vmem:[%s2173_s6 + $0x9] ss:$0 sm:$0xff] }
 0x9af   :  { %v856_v57 = vadd.f32 %v1646_v47, %v855_v56  ;;  %1048 = vmatpush.bf16.msra.mxu1 %v1613_v48 }
 0x9b1   :  { %v859_v58 = vsel %vm167_vm8, %v856_v57, -inf }
 0x9b2   :  { %860 = vmax.xlane.f32.xlu0 %v859_v58 }
 0x9b3   :  { %1049 = vmatpush.bf16.msra.mxu1 %v1612_v9 }
 0x9b6   :  { %v857_v59 = vpop.f32.mrf.mxu2 }
 0x9be   :  { %1509 = vmatmul.msk.bf16.vlgmr.msrb.gmra.mxu1 %vm147_vm7, %v775_v33  ;;  %v976_v61 = vpop.f32.mrf.mxu2 }
 0x9bf   :  { %v977_v62 = vadd.f32 %v1647_v60, %v976_v61 }
 0x9c1   :  { %v980_v63 = vsel %vm167_vm8, %v977_v62, -inf }
 0x9c2   :  { %981 = vmax.xlane.f32.xlu2 %v980_v63 }
 0x9c6   :  { %871 = vrot.lane.b32.xlu0 %v780_v30, %s1755_s13  ;;  %v978_v0 = vpop.f32.mrf.mxu2 }
 0xa25   :  { %v861_v1 = vpop.xlane.xlu0 %860 }
 0xa26   :  { %v862_v2 = vsub.f32 %v856_v57, %v861_v1 }
 0xa28   :  { %v863_v3 = vmul.f32 1.442695, %v862_v2 }
 0xa2a   :  { %1696 = vpow2.f32 %v863_v3 }
 0xa2b   :  { %v831_v4 = vpop.f32.mrf.mxu1 }
 0xa2c   :  { %835 = vst.msk [vmem:[#allocation2] sm:$0xff] %vm147_vm7, %v831_v4 }
 0xa30   :  { %v1697_v5 = vpop.eup %1696 }
 0xa31   :  { %v865_v6 = vsel %vm167_vm8, %v1697_v5, 0.0 }
 0xa32   :  { %866 = vadd.xlane.f32.xlu1 %v865_v6 }
 0xa33   :  { %v833_v7 = vpop.f32.mrf.mxu1 }
 0xa35   :  { %v982_v10 = vpop.xlane.xlu2 %981 }
 0xa36   :  { %v983_v11 = vsub.f32 %v977_v62, %v982_v10  ;;  %v1615_v10 = vld [vmem:[%s2171_s4 + $0x18] sm:$0xff] }
 0xa38   :  { %v984_v12 = vmul.f32 1.442695, %v983_v11  ;;  %v872_v15 = vpop.permute.xlu0 %871 }
 0xa39   :  { %v877_v16 = vsel %vm185_vm9, %v872_v15, 0 }
 0xa3a   :  { %1698 = vpow2.f32 %v984_v12  ;;  %886 = vmatpush.bf16.msra.mxu0 %v877_v16 }
 0xa3b   :  { %v919_v17 = vpop.f32.mrf.mxu1 }
 0xa3c   :  { %v920_v18 = vadd.f32 %v1647_v60, %v919_v17 }
 0xa3e   :  { %v923_v19 = vsel %vm167_vm8, %v920_v18, -inf }
 0xa3f   :  { %924 = vmax.xlane.f32.xlu1 %v923_v19 }
 0xa40   :  { %v1699_v24 = vpop.eup %1698 }
 0xa41   :  { %v986_v25 = vsel %vm167_vm8, %v1699_v24, 0.0 }
 0xa42   :  { %987 = vadd.xlane.f32.xlu2 %v986_v25 }
 0xa43   :  { %v921_v26 = vpop.f32.mrf.mxu1 }
 0xa58   :  { %992 = vrot.lane.b32.xlu1 %v2010_v14, %s1755_s13 }
 0xaa5   :  { %v867_v27 = vpop.xlane.xlu1 %866 }
 0xaa6   :  { %1700 = vrcp.f32 %v867_v27 }
 0xaac   :  { %v1701_v28 = vpop.eup %1700 }
 0xaad   :  { %v869_v29 = vmul.f32 %v1701_v28, %v1697_v5 }
 0xaaf   :  { %v870_v30 = vpack.c.bf16 %v869_v29, %v869_v29 }
 0xab1   :  { %1508 = vmatmul.msk.bf16.vlgmr.msra.gmra.mxu0 %vm167_vm8, %v870_v30 }
 0xab2   :  { %v925_v31 = vpop.xlane.xlu1 %924 }
 0xab3   :  { %v926_v32 = vsub.f32 %v920_v18, %v925_v31 }
 0xab5   :  { %v927_v33 = vmul.f32 1.442695, %v926_v32  ;;  %v988_v46 = vpop.xlane.xlu2 %987 }
 0xab7   :  { %1702 = vpow2.f32 %v927_v33 }
 0xab8   :  { %1704 = vrcp.f32 %v988_v46 }
 0xabd   :  { %v1703_v34 = vpop.eup %1702 }
 0xabe   :  { %v929_v35 = vsel %vm167_vm8, %v1703_v34, 0.0  ;;  %v1705_v36 = vpop.eup %1704 }
 0xabf   :  { %930 = vadd.xlane.f32.xlu2 %v929_v35  ;;  %v990_v22 = vmul.f32 %v1705_v36, %v1699_v24 }
 0xac1   :  { %v991_v38 = vpack.c.bf16 %v990_v22, %v990_v22 }
 0xaca   :  { %v993_v37 = vpop.permute.xlu1 %992 }
 0xacb   :  { %v998_v13 = vsel %vm185_vm9, %v993_v37, 0  ;;  %v1649_v37 = vld [vmem:[%s2173_s6 + $0xa] ss:$0 sm:$0xff] }
 0xacc   :  { %1007 = vmatpush.bf16.msrb.mxu0 %v998_v13 }
 0xacf   :  { %1512 = vmatmul.msk.bf16.vlgmr.msrb.gmra.mxu0 %vm167_vm8, %v991_v38 }
 0xad7   :  { %935 = vrot.lane.b32.xlu2 %v2010_v14, %s1756_s14 }
 0xb2e   :  { %v888_v21 = vpop.f32.mrf.mxu0 }
 0xb2f   :  { %893 = vrot.lane.b32.xlu0 %v888_v21, %s1757_s15 }
 0xb32   :  { %v931_v39 = vpop.xlane.xlu2 %930 }
 0xb33   :  { %1706 = vrcp.f32 %v931_v39 }
 0xb36   :  { %v890_v47 = vpop.f32.mrf.mxu0 }
 0xb39   :  { %v1707_v40 = vpop.eup %1706 }
 0xb3a   :  { %v933_v41 = vmul.f32 %v1707_v40, %v1703_v34  ;;  %v936_v42 = vpop.permute.xlu2 %935 }
 0xb3b   :  { %v941_v8 = vsel %vm185_vm9, %v936_v42, 0 }
 0xb3c   :  { %v934_v43 = vpack.c.bf16 %v933_v41, %v933_v41  ;;  %950 = vmatpush.bf16.msrb.mxu3 %v941_v8  ;;  %v1650_v41 = vld [vmem:[%s2173_s6 + $0xb] ss:$0 sm:$0xff] }
 0xb3f   :  { %1510 = vmatmul.msk.bf16.vlgmr.msrb.gmra.mxu3 %vm167_vm8, %v934_v43 }
 0xb40   :  { %1141 = vmatpush.bf16.msra.mxu3 %v1615_v10 }
 0xb4c   :  { %v1009_v44 = vpop.f32.mrf.mxu0 }
 0xb4d   :  { %1014 = vrot.lane.b32.xlu0 %v1009_v44, %s1757_s15 }
 0xb54   :  { %v1011_v45 = vpop.f32.mrf.mxu0 }
 0xb55   :  { %v1651_v45 = vld [vmem:[%s2175_s8 + $0x1] ss:$0 sm:$0xff] }
 0xba1   :  { %v894_v14 = vpop.permute.xlu0 %893 }
 0xba2   :  { %896 = vst.msk [vmem:[#allocation2] sm:$0xff] %vm263_vm10, %v894_v14 }
 0xba9   :  { %v1018_v52 = vld [vmem:[#allocation2] sm:$0xff] }
 0xbbf   :  { %v1015_v50 = vpop.permute.xlu0 %1014 }
 0xbc2   :  { %v952_v49 = vpop.f32.mrf.mxu3 }
 0xbc3   :  { %956 = vst.msk [vmem:[#allocation2 + $0x8] sm:$0xff] %vm147_vm7, %v952_v49  ;;  %v1623_v49 = vld [vmem:[%s2172_s5 + $0x78] sm:$0xff] }
 0xbc4   :  { %1017 = vst.msk [vmem:[#allocation2 + $0x8] sm:$0xff] %vm263_vm10, %v1015_v50  ;;  %1296 = vmatpush.bf16.msrb.mxu2 %v1623_v49 }
 0xbca   :  { %v954_v51 = vpop.f32.mrf.mxu3 }
 0xbcb   :  { %v1019_v53 = vld [vmem:[#allocation2 + $0x8] sm:$0xff] }
 0xbcc   :  { %v1020_v54 = vpack.c.bf16 %v1019_v53, %v1018_v52  ;;  %v1622_v53 = vld [vmem:[%s2172_s5 + $0x70] sm:$0xff] }
 0xbcd   :  { %1297 = vmatpush.bf16.msrb.mxu2 %v1622_v53 }
 0xbce   :  { %1525 = vmatmul.msk.bf16.vlgmr.msra.gmra.mxu1 %vm41_vm0, %v1020_v54 }
 0xc4b   :  { %v1051_v56 = vpop.f32.mrf.mxu1 }
 0xc4c   :  { %v1052_v57 = vadd.f32 %v1648_v55, %v1051_v56 }
 0xc4e   :  { %v1056_v58 = vadd.f32 %v1052_v57, %v1998_v20  ;;  %v1621_v57 = vld [vmem:[%s2172_s5 + $0x68] sm:$0xff] }
 0xc4f   :  { %1298 = vmatpush.bf16.msrb.mxu2 %v1621_v57 }
 0xc50   :  { %v1058_v59 = vsel %vm41_vm0, %v1056_v58, 0.0  ;;  %v1064_v60 = vmul.f32 %v1056_v58, %v1056_v58 }
 0xc51   :  { %1059 = vadd.xlane.f32.xlu1 %v1058_v59 }
 0xc52   :  { %v1066_v61 = vsel %vm41_vm0, %v1064_v60, 0.0  ;;  %v1620_v60 = vld [vmem:[%s2172_s5 + $0x60] sm:$0xff] }
 0xc53   :  { %v1053_v62 = vpop.f32.mrf.mxu1  ;;  %1067 = vadd.xlane.f32.xlu2 %v1066_v61  ;;  %1299 = vmatpush.bf16.msrb.mxu2 %v1620_v60 }
 0xc54   :  { %v1054_v63 = vadd.f32 %v1648_v55, %v1053_v62 }
 0xc56   :  { %v1057_v0 = vadd.f32 %v1054_v63, %v2000_v23  ;;  %v1614_v23 = vld [vmem:[%s2171_s4 + $0x10] sm:$0xff] }
 0xc57   :  { %1142 = vmatpush.bf16.msra.mxu3 %v1614_v23 }
 0xc58   :  { %v1061_v1 = vsel %vm41_vm0, %v1057_v0, 0.0  ;;  %v1065_v2 = vmul.f32 %v1057_v0, %v1057_v0 }
 0xc59   :  { %1062 = vadd.xlane.f32.xlu0 %v1061_v1  ;;  %v1619_v1 = vld [vmem:[%s2172_s5 + $0x58] sm:$0xff] }
 0xc5a   :  { %v1069_v3 = vsel %vm41_vm0, %v1065_v2, 0.0  ;;  %1300 = vmatpush.bf16.msrb.mxu2 %v1619_v1 }
 0xc5b   :  { %1070 = vadd.xlane.f32.xlu1 %v1069_v3 }
 0xcc4   :  { %v1060_v4 = vpop.xlane.xlu1 %1059 }
 0xcc5   :  { %v1072_v20 = vmul.f32 0.03125, %v1060_v4 }
 0xcc6   :  { %v1068_v5 = vpop.xlane.xlu2 %1067 }
 0xcc7   :  { %v1076_v6 = vmul.f32 %v1072_v20, %v1072_v20  ;;  %v1074_v7 = vmul.f32 0.03125, %v1068_v5  ;;  %v1080_v36 = vsub.f32 %v1056_v58, %v1072_v20  ;;  %v1618_v5 = vld [vmem:[%s2172_s5 + $0x50] sm:$0xff] }
 0xcc8   :  { %1301 = vmatpush.bf16.msrb.mxu2 %v1618_v5 }
 0xcc9   :  { %v1078_v11 = vsub.f32 %v1074_v7, %v1076_v6 }
 0xccb   :  { %v1082_v12 = vadd.f32 1e-12, %v1078_v11 }
 0xccc   :  { %v1063_v15 = vpop.xlane.xlu0 %1062 }
 0xccd   :  { %1708 = vrsqrt.f32 %v1082_v12  ;;  %v1073_v16 = vmul.f32 0.03125, %v1063_v15  ;;  %vm1090_vm8 = vweird.f32 %v1082_v12 }
 0xcce   :  { %v1071_v17 = vpop.xlane.xlu1 %1070 }
 0xccf   :  { %v1077_v18 = vmul.f32 %v1073_v16, %v1073_v16  ;;  %v1075_v19 = vmul.f32 0.03125, %v1071_v17  ;;  %v1081_v21 = vsub.f32 %v1057_v0, %v1073_v16  ;;  %v1617_v16 = vld [vmem:[%s2172_s5 + $0x48] sm:$0xff] }
 0xcd0   :  { %1302 = vmatpush.bf16.msrb.mxu2 %v1617_v16 }
 0xcd1   :  { %v1079_v24 = vsub.f32 %v1075_v19, %v1077_v18 }
 0xcd3   :  { %v1709_v25 = vpop.eup %1708  ;;  %v1083_v26 = vadd.f32 1e-12, %v1079_v24 }
 0xcd4   :  { %v1085_v27 = vmul.f32 %v1709_v25, %v1082_v12  ;;  %vm1091_vm7 = vweird.f32 %v1709_v25 }
 0xcd5   :  { %1710 = vrsqrt.f32 %v1083_v26  ;;  %vm1092_vm9 = vmor %vm1090_vm8, %vm1091_vm7  ;;  %vm1100_vm11 = vweird.f32 %v1083_v26 }
 0xcd6   :  { %v1086_v28 = vmul.f32 %v1709_v25, %v1085_v27 }
 0xcd8   :  { %v1087_v29 = vmul.f32 0.5, %v1086_v28  ;;  %v1616_v28 = vld [vmem:[%s2172_s5 + $0x40] sm:$0xff] }
 0xcd9   :  { %1303 = vmatpush.bf16.msrb.mxu2 %v1616_v28 }
 0xcda   :  { %v1088_v30 = vsub.f32 1.5, %v1087_v29 }
 0xcdb   :  { %v1711_v31 = vpop.eup %1710 }
 0xcdc   :  { %v1089_v32 = vmul.f32 %v1709_v25, %v1088_v30  ;;  %v1095_v33 = vmul.f32 %v1711_v31, %v1083_v26  ;;  %vm1101_vm10 = vweird.f32 %v1711_v31 }
 0xcdd   :  { %vm1102_vm12 = vmor %vm1100_vm11, %vm1101_vm10 }
 0xcde   :  { %v1096_v34 = vmul.f32 %v1711_v31, %v1095_v33  ;;  %v1093_v46 = vsel %vm1092_vm9, %v1709_v25, %v1089_v32 }
 0xcdf   :  { %v1104_v13 = vmul.f32 %v1093_v46, %v1080_v36 }
 0xce0   :  { %v1097_v35 = vmul.f32 0.5, %v1096_v34 }
 0xce1   :  { %v1107_v47 = vmul.f32 %v1649_v37, %v1104_v13 }
 0xce2   :  { %v1098_v22 = vsub.f32 1.5, %v1097_v35 }
 0xce3   :  { %v2089_v8 = vadd.f32 %v1650_v41, %v1107_v47 }
 0xce4   :  { %v1099_v38 = vmul.f32 %v1711_v31, %v1098_v22 }
 0xce6   :  { %v1103_v39 = vsel %vm1102_vm12, %v1711_v31, %v1099_v38 }
 0xce7   :  { %v1105_v40 = vmul.f32 %v1103_v39, %v1081_v21 }
 0xce9   :  { %v1108_v42 = vmul.f32 %v1649_v37, %v1105_v40 }
 0xceb   :  { %v2091_v43 = vadd.f32 %v1650_v41, %v1108_v42 }
 0xced   :  { %v1112_v44 = vpack.c.bf16 %v2091_v43, %v2089_v8 }
 0xcef   :  { %1538 = vmatmul.msk.bf16.vlgmr.msra.gmra.mxu3 %vm41_vm0, %v1112_v44 }
 0xd72   :  { %v1144_v14 = vpop.f32.mrf.mxu3 }
 0xd73   :  { %v2099_v48 = vadd.f32 %v1651_v45, %v1144_v14 }
 0xd75   :  { %v2102_v9 = vmul.f32 0.70710677, %v2099_v48 }
 0xd77   :  { %v1153_v50 = vand.u32 2147483647, %v2102_v9  ;;  %vm1219_vm6 = vcmp.ge.f32.partialorder %v2102_v9, 0.0  ;;  %v1652_v9 = vld [vmem:[%s2173_s6 + $0xc] ss:$0 sm:$0xff] }
 0xd79   :  { %v1155_v51 = vmul.f32 0.3275911, %v1153_v50  ;;  %v1207_v23 = vsub.f32 0.0, %v1153_v50 }
 0xd7a   :  { %v1146_v52 = vpop.f32.mrf.mxu3 }
 0xd7b   :  { %v1157_v54 = vadd.f32 1.0, %v1155_v51  ;;  %v2111_v55 = vadd.f32 %v1651_v45, %v1146_v52  ;;  %v1209_v24 = vmul.f32 %v1207_v23, %v1153_v50 }
 0xd7d   :  { %1712 = vrcp.f32 %v1157_v54  ;;  %v2114_v56 = vmul.f32 0.70710677, %v2111_v55  ;;  %v1170_v2 = vand.u32 2147483648, %v1157_v54  ;;  %v1168_v4 = vand.u32 2147483647, %v1157_v54 }
 0xd7e   :  { %vm1164_vm14 = vweird.f32 %v1157_v54  ;;  %v1211_v32 = vmul.f32 1.442695, %v1209_v24 }
 0xd7f   :  { %v1154_v58 = vand.u32 2147483647, %v2114_v56  ;;  %v1171_v6 = vor.u32 1.1754944e-38, %v1170_v2  ;;  %vm1169_vm1 = vcmp.eq.f32.partialorder %v1168_v4, 8.507059e+37  ;;  %vm1220_vm7 = vcmp.ge.f32.partialorder %v2114_v56, 0.0 }
 0xd81   :  { %v1156_v59 = vmul.f32 0.3275911, %v1154_v58  ;;  %v1208_v35 = vsub.f32 0.0, %v1154_v58 }
 0xd83   :  { %v1713_v61 = vpop.eup %1712  ;;  %v1158_v63 = vadd.f32 1.0, %v1156_v59  ;;  %v1210_v38 = vmul.f32 %v1208_v35, %v1154_v58 }
 0xd84   :  { %v1160_v62 = vmul.f32 %v1713_v61, %v1157_v54  ;;  %vm1165_vm13 = vweird.f32 %v1713_v61 }
 0xd85   :  { %1714 = vrcp.f32 %v1158_v63  ;;  %vm1166_vm15 = vmor %vm1164_vm14, %vm1165_vm13  ;;  %v1185_v19 = vand.u32 2147483648, %v1158_v63  ;;  %v1183_v26 = vand.u32 2147483647, %v1158_v63  ;;  %vm1179_vm3 = vweird.f32 %v1158_v63 }
 0xd86   :  { %v1161_v0 = vsub.f32 1.0, %v1160_v62  ;;  %1716 = vpow2.f32 %v1211_v32  ;;  %v1213_v41 = vmul.f32 1.442695, %v1210_v38  ;;  %vm1369_vm14 = vcmask 1040384  }
 0xd87   :  { %v1186_v31 = vor.u32 1.1754944e-38, %v1185_v19  ;;  %vm1184_vm5 = vcmp.eq.f32.partialorder %v1183_v26, 8.507059e+37  ;;  %v1625_v19 = vld [vmem:[%s2176_s9 + $0x8] sm:$0xff] }
 0xd88   :  { %v1162_v3 = vmul.f32 %v1713_v61, %v1161_v0  ;;  %1718 = vpow2.f32 %v1213_v41  ;;  %v1150_v0 = vmul.f32 0.5, %v2111_v55  ;;  %1399 = vmatpush.bf16.msra.mxu0 %v1625_v19 }
 0xd8a   :  { %v1163_v20 = vadd.f32 %v1713_v61, %v1162_v3 }
 0xd8b   :  { %v1715_v7 = vpop.eup %1714 }
 0xd8c   :  { %v1167_v10 = vsel %vm1166_vm15, %v1713_v61, %v1163_v20  ;;  %v1175_v12 = vmul.f32 %v1715_v7, %v1158_v63  ;;  %vm1180_vm2 = vweird.f32 %v1715_v7  ;;  %v1717_v42 = vpop.eup %1716  ;;  %v1149_v63 = vmul.f32 0.5, %v2099_v48 }
 0xd8d   :  { %v1172_v11 = vsel %vm1169_vm1, %v1171_v6, %v1167_v10  ;;  %vm1181_vm4 = vmor %vm1179_vm3, %vm1180_vm2  ;;  %vm1407_vm15 = vcmask 254976  }
 0xd8e   :  { %v1189_v15 = vmul.f32 1.0614054, %v1172_v11  ;;  %v1176_v17 = vsub.f32 1.0, %v1175_v12  ;;  %v1719_v54 = vpop.eup %1718 }
 0xd90   :  { %v1191_v18 = vadd.f32 -1.4531521, %v1189_v15  ;;  %v1177_v25 = vmul.f32 %v1715_v7, %v1176_v17 }
 0xd92   :  { %v1193_v27 = vmul.f32 %v1191_v18, %v1172_v11  ;;  %v1178_v29 = vadd.f32 %v1715_v7, %v1177_v25 }
 0xd94   :  { %v1195_v30 = vadd.f32 1.4214138, %v1193_v27  ;;  %v1182_v33 = vsel %vm1181_vm4, %v1715_v7, %v1178_v29  ;;  %v1624_v27 = vld [vmem:[%s2176_s9] sm:$0xff] }
 0xd95   :  { %v1187_v46 = vsel %vm1184_vm5, %v1186_v31, %v1182_v33  ;;  %1400 = vmatpush.bf16.msra.mxu0 %v1624_v27 }
 0xd96   :  { %v1197_v34 = vmul.f32 %v1195_v30, %v1172_v11  ;;  %v1190_v36 = vmul.f32 1.0614054, %v1187_v46 }
 0xd98   :  { %v1199_v22 = vadd.f32 -0.28449672, %v1197_v34  ;;  %v1192_v37 = vadd.f32 -1.4531521, %v1190_v36 }
 0xd9a   :  { %v1201_v13 = vmul.f32 %v1199_v22, %v1172_v11  ;;  %v1194_v21 = vmul.f32 %v1192_v37, %v1187_v46 }
 0xd9c   :  { %v1203_v39 = vadd.f32 0.2548296, %v1201_v13  ;;  %v1196_v47 = vadd.f32 1.4214138, %v1194_v21 }
 0xd9e   :  { %v1205_v40 = vmul.f32 %v1203_v39, %v1172_v11  ;;  %v1198_v44 = vmul.f32 %v1196_v47, %v1187_v46  ;;  %v1653_v47 = vld [vmem:[%s2173_s6 + $0xd] ss:$0 sm:$0xff] }
 0xda0   :  { %v1215_v45 = vmul.f32 %v1717_v42, %v1205_v40  ;;  %v1200_v14 = vadd.f32 -0.28449672, %v1198_v44 }
 0xda2   :  { %v1217_v49 = vsub.f32 1.0, %v1215_v45  ;;  %v1202_v50 = vmul.f32 %v1200_v14, %v1187_v46  ;;  %v1654_v45 = vld [vmem:[%s2173_s6 + $0xe] ss:$0 sm:$0xff] }
 0xda4   :  { %v1204_v51 = vadd.f32 0.2548296, %v1202_v50  ;;  %v1221_v52 = vsub.f32 0.0, %v1217_v49 }
 0xda6   :  { %v1206_v53 = vmul.f32 %v1204_v51, %v1187_v46  ;;  %v1223_v58 = vsel %vm1219_vm6, %v1217_v49, %v1221_v52 }
 0xda7   :  { %v1225_v61 = vadd.f32 1.0, %v1223_v58 }
 0xda8   :  { %v1216_v57 = vmul.f32 %v1719_v54, %v1206_v53 }
 0xda9   :  { %v1227_v2 = vmul.f32 %v1225_v61, %v1149_v63  ;;  %v1655_v61 = vld [vmem:[%s2173_s6 + $0x2] ss:$0 sm:$0xff] }
 0xdaa   :  { %v1218_v59 = vsub.f32 1.0, %v1216_v57 }
 0xdac   :  { %v1222_v60 = vsub.f32 0.0, %v1218_v59 }
 0xdae   :  { %v1224_v62 = vsel %vm1220_vm7, %v1218_v59, %v1222_v60 }
 0xdaf   :  { %v1226_v1 = vadd.f32 1.0, %v1224_v62 }
 0xdb1   :  { %v1228_v3 = vmul.f32 %v1226_v1, %v1150_v0 }
 0xdb3   :  { %v1229_v4 = vpack.c.bf16 %v1228_v3, %v1227_v2 }
 0xdb5   :  { %1304 = vmatmul.bf16.vlgmr.msrb.gmra.mxu2 %v1229_v4 }
 0xe38   :  { %v1305_v20 = vpop.f32.mrf.mxu2 }
 0xe39   :  { %v1306_v5 = vadd.f32 %v1652_v9, %v1305_v20 }
 0xe3b   :  { %v1310_v6 = vadd.f32 %v1306_v5, %v2089_v8 }
 0xe3d   :  { %v1312_v56 = vsel %vm41_vm0, %v1310_v6, 0.0  ;;  %v1318_v12 = vmul.f32 %v1310_v6, %v1310_v6 }
 0xe3e   :  { %1313 = vadd.xlane.f32.xlu1 %v1312_v56 }
 0xe3f   :  { %v1320_v15 = vsel %vm41_vm0, %v1318_v12, 0.0 }
 0xe40   :  { %v1307_v7 = vpop.f32.mrf.mxu2 }
 0xe41   :  { %v1308_v48 = vadd.f32 %v1652_v9, %v1307_v7 }
 0xe43   :  { %v1311_v55 = vadd.f32 %v1308_v48, %v2091_v43 }
 0xe45   :  { %v1315_v10 = vsel %vm41_vm0, %v1311_v55, 0.0  ;;  %v1319_v11 = vmul.f32 %v1311_v55, %v1311_v55 }
 0xe46   :  { %1316 = vadd.xlane.f32.xlu0 %v1315_v10 }
 0xe47   :  { %v1323_v23 = vsel %vm41_vm0, %v1319_v11, 0.0 }
 0xe48   :  { %1324 = vadd.xlane.f32.xlu2 %v1323_v23 }
 0xe4e   :  { %1321 = vadd.xlane.f32.xlu0 %v1320_v15 }
 0xeb1   :  { %v1314_v17 = vpop.xlane.xlu1 %1313 }
 0xeb2   :  { %v1326_v25 = vmul.f32 0.03125, %v1314_v17 }
 0xeb4   :  { %v1330_v30 = vmul.f32 %v1326_v25, %v1326_v25  ;;  %v1334_v50 = vsub.f32 %v1310_v6, %v1326_v25 }
 0xeb9   :  { %v1317_v16 = vpop.xlane.xlu0 %1316 }
 0xeba   :  { %v1327_v8 = vmul.f32 0.03125, %v1317_v16 }
 0xebb   :  { %v1325_v18 = vpop.xlane.xlu2 %1324 }
 0xebc   :  { %v1331_v43 = vmul.f32 %v1327_v8, %v1327_v8  ;;  %v1329_v24 = vmul.f32 0.03125, %v1325_v18  ;;  %v1335_v39 = vsub.f32 %v1311_v55, %v1327_v8 }
 0xebe   :  { %v1333_v26 = vsub.f32 %v1329_v24, %v1331_v43 }
 0xec0   :  { %v1337_v28 = vadd.f32 1e-12, %v1333_v26 }
 0xec1   :  { %v1322_v29 = vpop.xlane.xlu0 %1321 }
 0xec2   :  { %1720 = vrsqrt.f32 %v1337_v28  ;;  %v1328_v31 = vmul.f32 0.03125, %v1322_v29  ;;  %vm1354_vm9 = vweird.f32 %v1337_v28 }
 0xec4   :  { %v1332_v32 = vsub.f32 %v1328_v31, %v1330_v30 }
 0xec6   :  { %v1336_v33 = vadd.f32 1e-12, %v1332_v32 }
 0xec8   :  { %v1721_v34 = vpop.eup %1720  ;;  %1722 = vrsqrt.f32 %v1336_v33  ;;  %vm1344_vm12 = vweird.f32 %v1336_v33 }
 0xec9   :  { %v1349_v46 = vmul.f32 %v1721_v34, %v1337_v28  ;;  %vm1355_vm8 = vweird.f32 %v1721_v34 }
 0xeca   :  { %vm1356_vm10 = vmor %vm1354_vm9, %vm1355_vm8 }
 0xecb   :  { %v1350_v35 = vmul.f32 %v1721_v34, %v1349_v46 }
 0xecd   :  { %v1351_v36 = vmul.f32 0.5, %v1350_v35 }
 0xece   :  { %v1723_v22 = vpop.eup %1722 }
 0xecf   :  { %v1352_v37 = vsub.f32 1.5, %v1351_v36  ;;  %v1339_v13 = vmul.f32 %v1723_v22, %v1336_v33  ;;  %vm1345_vm11 = vweird.f32 %v1723_v22 }
 0xed0   :  { %vm1346_vm13 = vmor %vm1344_vm12, %vm1345_vm11 }
 0xed1   :  { %v1353_v38 = vmul.f32 %v1721_v34, %v1352_v37  ;;  %v1340_v21 = vmul.f32 %v1723_v22, %v1339_v13 }
 0xed3   :  { %v1357_v40 = vsel %vm1356_vm10, %v1721_v34, %v1353_v38  ;;  %v1341_v41 = vmul.f32 0.5, %v1340_v21 }
 0xed4   :  { %v1359_v42 = vmul.f32 %v1357_v40, %v1335_v39 }
 0xed5   :  { %v1342_v44 = vsub.f32 1.5, %v1341_v41 }
 0xed6   :  { %v1362_v14 = vmul.f32 %v1653_v47, %v1359_v42 }
 0xed7   :  { %v1343_v49 = vmul.f32 %v1723_v22, %v1342_v44 }
 0xed8   :  { %v1365_v52 = vadd.f32 %v1654_v45, %v1362_v14 }
 0xed9   :  { %v1347_v51 = vsel %vm1346_vm13, %v1723_v22, %v1343_v49 }
 0xeda   :  { %v1358_v53 = vmul.f32 %v1347_v51, %v1334_v50  ;;  %v1367_v57 = vrot.slane %v1365_v52, 7 }
 0xedc   :  { %v1361_v54 = vmul.f32 %v1653_v47, %v1358_v53 }
 0xede   :  { %v1364_v58 = vadd.f32 %v1654_v45, %v1361_v54 }
 0xee0   :  { %v1370_v59 = vsel %vm1369_vm14, %v1364_v58, %v1367_v57 }
 0xee1   :  { %v1371_v60 = vpack.c.bf16 %v1370_v59, %v1370_v59 }
 0xee3   :  { %1595 = vmatmul.msk.bf16.vlgmr.msra.gmra.mxu0 %vm41_vm0, %v1371_v60 }
 0xf60   :  { %v1402_v62 = vpop.f32.mrf.mxu0 }
 0xf61   :  { %v1403_v63 = vadd.f32 %v1655_v61, %v1402_v62 }
 0xf63   :  { %1724 = vtanh.f32 %v1403_v63 }
 0xf68   :  { %v1404_v0 = vpop.f32.mrf.mxu0 }
 0xf69   :  { %v1725_v1 = vpop.eup %1724 }
 0xf6a   :  { %1408 = vst.msk [vmem:[#allocation3] sm:$0x3] %vm1407_vm15, %v1725_v1 }
 0xf6b   :  { %1419 = dma.vmem_to_hbm [thread:$0]  %s1415_s2, 32, %s1417_s25, [#allocation4]  }
 0xf6c   :  { %1750 = dma.done.wait [#allocation4], 32  }
 0xf6d   :  { %1751 = vsyncadd [#allocation4], 4294967264 }
 0xf6e   :  { %1424 = vsyncpa [#allocation4], 1 }

</bundles_post_ra>
